<compile_context>
chip_gen: v7x
topology: tpu7x:2x2x1
jax: 0.10.0
libtpu: 0.0.40
codegen_flags: <defaults>
</compile_context>

<pallas_src>
import functools

import jax
import jax.numpy as jnp
from jax.experimental import pallas as pl
from jax.experimental.pallas import tpu as pltpu


# --------------------------------------------------------------------------
# Pallas kernel: windowed multi-head attention, head-packed bf16 output
# --------------------------------------------------------------------------
def _win_attn_kernel(q_ref, kt_ref, v_ref, bias_ref, o_ref, *, scale):
    """One grid step handles a block of `wb` windows, all heads at once.

    q / v blocks : (wb, h, N, d)  bf16
    k^T block    : (wb, h, d, N)  bf16   (pre-transposed in the wrapper)
    bias block   : (h, N, N)      f32    (shared by every window)
    out block    : (wb, N, h*d)   bf16   (heads packed into the lane dim)
    """
    wb, h, n, d = q_ref.shape
    # Leading-dim merges are layout-free: fold (window, head) into one batch dim.
    q = q_ref[...].reshape(wb * h, n, d)
    kt = kt_ref[...].reshape(wb * h, d, n)
    v = v_ref[...].reshape(wb * h, n, d)

    # Scores: batched contraction, bf16 operands, f32 accumulation on the MXU.
    s = jnp.einsum('bqd,bdk->bqk', q, kt,
                   preferred_element_type=jnp.float32)        # (wb*h, N, N)
    s = s * scale
    s = s.reshape(wb, h, n, n) + bias_ref[...][None]          # + rel-pos bias

    # Numerically-stable softmax; the divide goes to the EUP (approx recip).
    s = s - jnp.max(s, axis=-1, keepdims=True)
    p = jnp.exp(s)
    p = p * pl.reciprocal(jnp.sum(p, axis=-1, keepdims=True), approx=True)

    p = p.astype(v.dtype).reshape(wb * h, n, n)               # bf16 for 2nd MXU pass
    out = jnp.einsum('bqk,bkd->bqd', p, v,
                     preferred_element_type=jnp.float32)      # (wb*h, N, d) f32
    out = out.reshape(wb, h, n, d)

    # Pack heads into the lane dim in VMEM: (wb, h, N, d) -> (wb, N, h*d), so
    # the HBM writeback is a single lane-dense bf16 (wb, N, C) tile and no
    # post-kernel XLA transpose is needed.
    for hh in range(h):
        o_ref[:, :, hh * d:(hh + 1) * d] = out[:, hh].astype(o_ref.dtype)


def _vmem_capacity_bytes():
    try:
        return int(pltpu.get_tpu_info().vmem_capacity_bytes)
    except Exception:
        return 128 << 20   # v5e / v6e default; v7x is 64 MiB per TC


def window_attention(q, k_t, v, bias, scale):
    """q, v: (nWB, h, N, d); k_t: (nWB, h, d, N); bias: (h, N, N).

    Returns bf16 (nWB, N, h*d) with heads packed along the last dim.
    """
    wn, h, n, d = q.shape
    c = h * d

    # --- VMEM accounting per window (Pallas double-buffers every BlockSpec) --
    bytes_qkv = 2 * (3 * h * n * d * 2)                    # q, k^T, v  bf16, x2 buffers
    bytes_out = 2 * (n * c * 2)                            # packed bf16 out, x2 buffers
    bytes_tmp = 3 * h * n * n * 4 + 2 * h * n * d * 4      # f32 scores/probs + f32 acc
    per_win = bytes_qkv + bytes_out + bytes_tmp
    bytes_bias = 2 * h * n * n * 4                         # shared bias block, x2 buffers

    cap = _vmem_capacity_bytes()
    # ~cap/6 (<= 24 MiB) per resident block: big enough to amortise the
    # ~0.35us/step overhead, small enough for v7x's 64 MiB VMEM.
    budget = max(2 << 20, min(24 << 20, cap // 6))
    wb = max(1, budget // max(per_win, 1))
    # Keep at least 2 grid steps so both v7x TensorCores get work.
    wb = min(wb, max(1, pl.cdiv(wn, 2)))

    # Pad the window axis up to a multiple of wb (avoids degenerate wb when
    # nWB is prime/awkward); padded windows compute finite garbage, sliced off.
    wn_pad = pl.cdiv(wn, wb) * wb
    if wn_pad != wn:
        pad = ((0, wn_pad - wn), (0, 0), (0, 0), (0, 0))
        q = jnp.pad(q, pad)
        k_t = jnp.pad(k_t, pad)
        v = jnp.pad(v, pad)

    # Raise the scoped VMEM limit consistently with the chosen block
    # (>= 32 MiB so v5e's 16 MiB default never bites; <= 3/4 physical for v7x).
    vmem_limit = int(min(cap * 3 // 4,
                         max(32 << 20, bytes_bias + 2 * wb * per_win)))

    out = pl.pallas_call(
        functools.partial(_win_attn_kernel, scale=scale),
        out_shape=jax.ShapeDtypeStruct((wn_pad, n, c), jnp.bfloat16),
        grid=(wn_pad // wb,),
        in_specs=[pl.BlockSpec((wb, h, n, d), lambda i: (i, 0, 0, 0)),
                  pl.BlockSpec((wb, h, d, n), lambda i: (i, 0, 0, 0)),
                  pl.BlockSpec((wb, h, n, d), lambda i: (i, 0, 0, 0)),
                  pl.BlockSpec((h, n, n), lambda i: (0, 0, 0))],
        out_specs=pl.BlockSpec((wb, n, c), lambda i: (i, 0, 0)),
        compiler_params=pltpu.CompilerParams(
            dimension_semantics=("parallel",),
            vmem_limit_bytes=vmem_limit),
    )(q.astype(jnp.bfloat16), k_t.astype(jnp.bfloat16),
      v.astype(jnp.bfloat16), bias.astype(jnp.float32))

    return out[:wn] if wn_pad != wn else out


# --------------------------------------------------------------------------
# Plain-JAX glue (window reshuffles, tiny DynamicPosBias MLP)
# --------------------------------------------------------------------------
def layer_norm(x, g, b, eps=1e-5):
    m = jnp.mean(x, axis=-1, keepdims=True)
    v = jnp.mean((x - m) ** 2, axis=-1, keepdims=True)
    return (x - m) / jnp.sqrt(v + eps) * g + b


def dyn_pos_bias(p, biases):
    # DynamicPosBias with residual=False: pos3(pos2(pos1(pos_proj(biases))))
    x = biases @ p['proj_w'] + p['proj_b']
    for blk in ('pos1', 'pos2', 'pos3'):
        q = p[blk]
        x = layer_norm(x, q['ln_g'], q['ln_b'])
        x = jnp.maximum(x, 0.0)
        x = x @ q['w'] + q['b']
    return x


def rel_pos_setup(H_sp, W_sp):
    ph = jnp.arange(1 - H_sp, H_sp)
    pw = jnp.arange(1 - W_sp, W_sp)
    biases = jnp.stack(jnp.meshgrid(ph, pw, indexing='ij'))
    biases = biases.reshape(2, -1).T.astype(jnp.float32)             # (M, 2)
    ch = jnp.arange(H_sp)
    cw = jnp.arange(W_sp)
    coords = jnp.stack(jnp.meshgrid(ch, cw, indexing='ij')).reshape(2, -1)
    rel = coords[:, :, None] - coords[:, None, :]                     # (2, N, N)
    rel = rel.transpose(1, 2, 0)
    rel = rel.at[:, :, 0].add(H_sp - 1)
    rel = rel.at[:, :, 1].add(W_sp - 1)
    rel = rel.at[:, :, 0].multiply(2 * W_sp - 1)
    idx = rel.sum(-1)                                                 # (N, N)
    return biases, idx


def im2win(x_tok, H, W, H_sp, W_sp, num_heads, *, k_layout=False):
    B, L, C = x_tok.shape
    x = x_tok.transpose(0, 2, 1).reshape(B, C, H, W)
    x = x.reshape(B, C, H // H_sp, H_sp, W // W_sp, W_sp)
    x = x.transpose(0, 2, 4, 3, 5, 1).reshape(-1, H_sp * W_sp, C)
    x = x.reshape(-1, H_sp * W_sp, num_heads, C // num_heads)
    if k_layout:
        return x.transpose(0, 2, 3, 1)    # (nWB, heads, d, N) == K^T
    return x.transpose(0, 2, 1, 3)        # (nWB, heads, N, d)


def win2img(x, H_sp, W_sp, H, W):
    nWB, N, C = x.shape
    B = nWB // ((H // H_sp) * (W // W_sp))
    x = x.reshape(B, H // H_sp, W // W_sp, H_sp, W_sp, C)
    x = x.transpose(0, 1, 3, 2, 4, 5).reshape(B, H, W, C)
    return x


def _window_shape(H, W, idx, split_size):
    if idx == -1:
        return H, W
    if idx == 0:
        return H, split_size
    if idx == 1:
        return split_size, W
    raise ValueError(f'ERROR MODE {idx}')


# --------------------------------------------------------------------------
# SpatialDomain.forward(qkv, H, W, mask=None)  (mask=None, attn_drop=0)
# --------------------------------------------------------------------------
@functools.partial(jax.jit,
                   static_argnames=('H', 'W', 'idx', 'split_size', 'num_heads'))
def spatial_domain_forward(params, qkv, *, H, W, idx, split_size, num_heads):
    """qkv: (3, B, L, C) with L = H * W  ->  (B, H, W, C)."""
    q_tok, k_tok, v_tok = qkv[0], qkv[1], qkv[2]
    B, L, C = q_tok.shape
    assert L == H * W, 'flatten img_tokens has wrong size'
    head_dim = C // num_heads
    scale = head_dim ** (-0.5)
    H_sp, W_sp = _window_shape(H, W, idx, split_size)

    q = im2win(q_tok, H, W, H_sp, W_sp, num_heads)                   # (nWB, h, N, d)
    k_t = im2win(k_tok, H, W, H_sp, W_sp, num_heads, k_layout=True)  # (nWB, h, d, N)
    v = im2win(v_tok, H, W, H_sp, W_sp, num_heads)

    biases, rel_idx = rel_pos_setup(H_sp, W_sp)
    pos = dyn_pos_bias(params['pos'], biases)                        # (M, heads)
    N = H_sp * W_sp
    rpb = pos[rel_idx.reshape(-1)].reshape(N, N, num_heads).transpose(2, 0, 1)

    out = window_attention(q, k_t, v, rpb, scale)                    # (nWB, N, C) bf16
    return win2img(out, H_sp, W_sp, H, W).astype(qkv.dtype)          # (B, H, W, C)


# --------------------------------------------------------------------------
# Plain-JAX f32 reference (same math, no Pallas / no bf16) for the check
# --------------------------------------------------------------------------
def spatial_domain_reference(params, qkv, *, H, W, idx, split_size, num_heads):
    q_tok, k_tok, v_tok = qkv[0], qkv[1], qkv[2]
    B, L, C = q_tok.shape
    head_dim = C // num_heads
    scale = head_dim ** (-0.5)
    H_sp, W_sp = _window_shape(H, W, idx, split_size)
    q = im2win(q_tok, H, W, H_sp, W_sp, num_heads) * scale
    k = im2win(k_tok, H, W, H_sp, W_sp, num_heads)
    v = im2win(v_tok, H, W, H_sp, W_sp, num_heads)
    biases, rel_idx = rel_pos_setup(H_sp, W_sp)
    pos = dyn_pos_bias(params['pos'], biases)
    N = H_sp * W_sp
    rpb = pos[rel_idx.reshape(-1)].reshape(N, N, num_heads).transpose(2, 0, 1)
    s = jnp.einsum('whqd,whkd->whqk', q, k) + rpb[None]
    p = jax.nn.softmax(s, axis=-1)
    out = jnp.einsum('whqk,whkd->whqd', p, v)
    out = out.transpose(0, 2, 1, 3).reshape(-1, N, C)
    return win2img(out, H_sp, W_sp, H, W)


# --------------------------------------------------------------------------
# Deterministic synthetic parameters (DynamicPosBias is the only learnable part)
# --------------------------------------------------------------------------
def init_params(key, dim, num_heads):
    pos_dim = (dim // 4) // 4          # DynamicPosBias(dim // 4, ...) -> pos_dim
    assert pos_dim >= 1, "pick dim >= 16 so DynamicPosBias pos_dim >= 1"
    keys = iter(jax.random.split(key, 16))

    def rnd(shape, scale=0.02):
        return (scale * jax.random.normal(next(keys), shape)).astype(jnp.float32)

    p = {'proj_w': rnd((2, pos_dim)), 'proj_b': rnd((pos_dim,))}
    for name, out_d in (('pos1', pos_dim), ('pos2', pos_dim), ('pos3', num_heads)):
        p[name] = {'ln_g': jnp.ones((pos_dim,), jnp.float32),
                   'ln_b': jnp.zeros((pos_dim,), jnp.float32),
                   'w': rnd((pos_dim, out_d)),
                   'b': rnd((out_d,))}
    return {'pos': p}


if __name__ == "__main__":
    DIM, HEADS, SPLIT, RESO, IDX, B = 64, 4, 4, 8, 0, 2
    H = W = RESO
    L = H * W

    key = jax.random.PRNGKey(0)
    k_param, k_qkv = jax.random.split(key)
    params = init_params(k_param, DIM, HEADS)
    qkv = jax.random.normal(k_qkv, (3, B, L, DIM), jnp.float32)

    out = spatial_domain_forward(params, qkv, H=H, W=W, idx=IDX,
                                 split_size=SPLIT, num_heads=HEADS)
    out = jax.block_until_ready(out)

    assert out.shape == (B, H, W, DIM), out.shape
    assert bool(jnp.isfinite(out).all())

    ref = spatial_domain_reference(params, qkv, H=H, W=W, idx=IDX,
                                   split_size=SPLIT, num_heads=HEADS)
    err = float(jnp.max(jnp.abs(out - ref)))
    assert err < 1e-1, f"max abs err vs f32 reference = {err}"
    print("KERNEL_OK")
</pallas_src>

<mosaic_0001>
module attributes {stable_mosaic.version = 11 : i64} {
  func.func @_win_attn_kernel(%arg0: i32, %arg1: memref<2x4x32x16xbf16, #tpu.memory_space<vmem>>, %arg2: memref<2x4x16x32xbf16, #tpu.memory_space<vmem>>, %arg3: memref<2x4x32x16xbf16, #tpu.memory_space<vmem>>, %arg4: memref<4x32x32xf32, #tpu.memory_space<vmem>>, %arg5: memref<2x32x64xbf16, #tpu.memory_space<vmem>>) attributes {dimension_semantics = [#tpu.dimension_semantics<parallel>], iteration_bounds = array<i64: 2>, scalar_prefetch = 0 : i64, scratch_operands = 0 : i64, tpu.core_type = #tpu.core_type<tc>, window_params = [{transform_indices = @transform_0, window_bounds = array<i64: 2, 4, 32, 16>}, {transform_indices = @transform_1, window_bounds = array<i64: 2, 4, 16, 32>}, {transform_indices = @transform_2, window_bounds = array<i64: 2, 4, 32, 16>}, {pipeline_mode = #tpu.pipeline_mode<synchronous>, transform_indices = @transform_3, window_bounds = array<i64: 4, 32, 32>}, {transform_indices = @transform_4, window_bounds = array<i64: 2, 32, 64>}]} {
    %c0 = arith.constant 0 : index
    %c0_0 = arith.constant 0 : index
    %c0_1 = arith.constant 0 : index
    %c0_2 = arith.constant 0 : index
    %0 = vector.load %arg1[%c0, %c0_0, %c0_1, %c0_2] : memref<2x4x32x16xbf16, #tpu.memory_space<vmem>>, vector<2x4x32x16xbf16>
    %1 = vector.shape_cast %0 : vector<2x4x32x16xbf16> to vector<8x32x16xbf16>
    %c0_3 = arith.constant 0 : index
    %c0_4 = arith.constant 0 : index
    %c0_5 = arith.constant 0 : index
    %c0_6 = arith.constant 0 : index
    %2 = vector.load %arg2[%c0_3, %c0_4, %c0_5, %c0_6] : memref<2x4x16x32xbf16, #tpu.memory_space<vmem>>, vector<2x4x16x32xbf16>
    %3 = vector.shape_cast %2 : vector<2x4x16x32xbf16> to vector<8x16x32xbf16>
    %c0_7 = arith.constant 0 : index
    %c0_8 = arith.constant 0 : index
    %c0_9 = arith.constant 0 : index
    %c0_10 = arith.constant 0 : index
    %4 = vector.load %arg3[%c0_7, %c0_8, %c0_9, %c0_10] : memref<2x4x32x16xbf16, #tpu.memory_space<vmem>>, vector<2x4x32x16xbf16>
    %5 = vector.shape_cast %4 : vector<2x4x32x16xbf16> to vector<8x32x16xbf16>
    "tpu.trace_start"() <{level = 10 : i32, message = "bqd,bdk->bqk"}> : () -> ()
    %cst = arith.constant dense<0.000000e+00> : vector<8x32x32xf32>
    %6 = tpu.matmul %1, %3, %cst {dimension_numbers = #tpu.dot_dimension_numbers<[2], [1], [1], [2], [0, 0, 0, 1, 1, 2], [0], [0]>} : vector<8x32x16xbf16>, vector<8x16x32xbf16>, vector<8x32x32xf32> -> vector<8x32x32xf32>
    "tpu.trace_stop"() : () -> ()
    %cst_11 = arith.constant 2.500000e-01 : f32
    %7 = vector.broadcast %cst_11 : f32 to vector<8x32x32xf32>
    %8 = arith.mulf %6, %7 : vector<8x32x32xf32>
    %9 = vector.shape_cast %8 : vector<8x32x32xf32> to vector<2x4x32x32xf32>
    %c0_12 = arith.constant 0 : index
    %c0_13 = arith.constant 0 : index
    %c0_14 = arith.constant 0 : index
    %10 = vector.load %arg4[%c0_12, %c0_13, %c0_14] : memref<4x32x32xf32, #tpu.memory_space<vmem>>, vector<4x32x32xf32>
    %11 = vector.shape_cast %10 : vector<4x32x32xf32> to vector<1x4x32x32xf32>
    %12 = vector.broadcast %11 : vector<1x4x32x32xf32> to vector<2x4x32x32xf32>
    %13 = arith.addf %9, %12 : vector<2x4x32x32xf32>
    %cst_15 = arith.constant dense<0xFF800000> : vector<2x4x32xf32>
    %14 = vector.multi_reduction <maximumf>, %13, %cst_15 [3] : vector<2x4x32x32xf32> to vector<2x4x32xf32>
    %15 = vector.shape_cast %14 : vector<2x4x32xf32> to vector<2x4x32x1xf32>
    %16 = vector.broadcast %15 : vector<2x4x32x1xf32> to vector<2x4x32x32xf32>
    %17 = arith.subf %13, %16 : vector<2x4x32x32xf32>
    %18 = math.exp %17 : vector<2x4x32x32xf32>
    %cst_16 = arith.constant dense<0.000000e+00> : vector<2x4x32xf32>
    %19 = vector.multi_reduction <add>, %18, %cst_16 [3] : vector<2x4x32x32xf32> to vector<2x4x32xf32>
    %20 = vector.shape_cast %19 : vector<2x4x32xf32> to vector<2x4x32x1xf32>
    %21 = tpu.reciprocal %20 {approx = true} : vector<2x4x32x1xf32> -> vector<2x4x32x1xf32>
    %22 = vector.broadcast %21 : vector<2x4x32x1xf32> to vector<2x4x32x32xf32>
    %23 = arith.mulf %18, %22 : vector<2x4x32x32xf32>
    %24 = arith.truncf %23 : vector<2x4x32x32xf32> to vector<2x4x32x32xbf16>
    %25 = vector.shape_cast %24 : vector<2x4x32x32xbf16> to vector<8x32x32xbf16>
    "tpu.trace_start"() <{level = 10 : i32, message = "bqk,bkd->bqd"}> : () -> ()
    %cst_17 = arith.constant dense<0.000000e+00> : vector<8x32x16xf32>
    %26 = tpu.matmul %25, %5, %cst_17 {dimension_numbers = #tpu.dot_dimension_numbers<[2], [1], [1], [2], [0, 0, 0, 1, 1, 2], [0], [0]>} : vector<8x32x32xbf16>, vector<8x32x16xbf16>, vector<8x32x16xf32> -> vector<8x32x16xf32>
    "tpu.trace_stop"() : () -> ()
    %27 = vector.shape_cast %26 : vector<8x32x16xf32> to vector<2x4x32x16xf32>
    %28 = vector.extract_strided_slice %27 {offsets = [0, 0, 0, 0], sizes = [2, 1, 32, 16], strides = [1, 1, 1, 1]} : vector<2x4x32x16xf32> to vector<2x1x32x16xf32>
    %29 = vector.shape_cast %28 : vector<2x1x32x16xf32> to vector<2x32x16xf32>
    %30 = arith.truncf %29 : vector<2x32x16xf32> to vector<2x32x16xbf16>
    %c0_18 = arith.constant 0 : index
    %c0_19 = arith.constant 0 : index
    %c0_20 = arith.constant 0 : index
    %31 = vector.load %arg5[%c0_18, %c0_19, %c0_20] : memref<2x32x64xbf16, #tpu.memory_space<vmem>>, vector<2x32x16xbf16>
    tpu.vector_store %arg5[%c0_18, %c0_19, %c0_20], %30 {strides = array<i32>} : memref<2x32x64xbf16, #tpu.memory_space<vmem>>, vector<2x32x16xbf16>,
    %32 = vector.extract_strided_slice %27 {offsets = [0, 1, 0, 0], sizes = [2, 1, 32, 16], strides = [1, 1, 1, 1]} : vector<2x4x32x16xf32> to vector<2x1x32x16xf32>
    %33 = vector.shape_cast %32 : vector<2x1x32x16xf32> to vector<2x32x16xf32>
    %34 = arith.truncf %33 : vector<2x32x16xf32> to vector<2x32x16xbf16>
    %c0_21 = arith.constant 0 : index
    %c0_22 = arith.constant 0 : index
    %c16 = arith.constant 16 : index
    %35 = vector.load %arg5[%c0_21, %c0_22, %c16] : memref<2x32x64xbf16, #tpu.memory_space<vmem>>, vector<2x32x16xbf16>
    tpu.vector_store %arg5[%c0_21, %c0_22, %c16], %34 {strides = array<i32>} : memref<2x32x64xbf16, #tpu.memory_space<vmem>>, vector<2x32x16xbf16>,
    %36 = vector.extract_strided_slice %27 {offsets = [0, 2, 0, 0], sizes = [2, 1, 32, 16], strides = [1, 1, 1, 1]} : vector<2x4x32x16xf32> to vector<2x1x32x16xf32>
    %37 = vector.shape_cast %36 : vector<2x1x32x16xf32> to vector<2x32x16xf32>
    %38 = arith.truncf %37 : vector<2x32x16xf32> to vector<2x32x16xbf16>
    %c0_23 = arith.constant 0 : index
    %c0_24 = arith.constant 0 : index
    %c32 = arith.constant 32 : index
    %39 = vector.load %arg5[%c0_23, %c0_24, %c32] : memref<2x32x64xbf16, #tpu.memory_space<vmem>>, vector<2x32x16xbf16>
    tpu.vector_store %arg5[%c0_23, %c0_24, %c32], %38 {strides = array<i32>} : memref<2x32x64xbf16, #tpu.memory_space<vmem>>, vector<2x32x16xbf16>,
    %40 = vector.extract_strided_slice %27 {offsets = [0, 3, 0, 0], sizes = [2, 1, 32, 16], strides = [1, 1, 1, 1]} : vector<2x4x32x16xf32> to vector<2x1x32x16xf32>
    %41 = vector.shape_cast %40 : vector<2x1x32x16xf32> to vector<2x32x16xf32>
    %42 = arith.truncf %41 : vector<2x32x16xf32> to vector<2x32x16xbf16>
    %c0_25 = arith.constant 0 : index
    %c0_26 = arith.constant 0 : index
    %c48 = arith.constant 48 : index
    %43 = vector.load %arg5[%c0_25, %c0_26, %c48] : memref<2x32x64xbf16, #tpu.memory_space<vmem>>, vector<2x32x16xbf16>
    tpu.vector_store %arg5[%c0_25, %c0_26, %c48], %42 {strides = array<i32>} : memref<2x32x64xbf16, #tpu.memory_space<vmem>>, vector<2x32x16xbf16>,
    return
  }
  func.func @transform_0(%arg0: i32) -> (i32, i32, i32, i32) {
    %c0_i32 = arith.constant 0 : i32
    %c0_i32_0 = arith.constant 0 : i32
    %c0_i32_1 = arith.constant 0 : i32
    %c0_i32_2 = arith.constant 0 : i32
    return %arg0, %c0_i32, %c0_i32_0, %c0_i32_1 : i32, i32, i32, i32
  }
  func.func @transform_1(%arg0: i32) -> (i32, i32, i32, i32) {
    %c0_i32 = arith.constant 0 : i32
    %c0_i32_0 = arith.constant 0 : i32
    %c0_i32_1 = arith.constant 0 : i32
    %c0_i32_2 = arith.constant 0 : i32
    return %arg0, %c0_i32, %c0_i32_0, %c0_i32_1 : i32, i32, i32, i32
  }
  func.func @transform_2(%arg0: i32) -> (i32, i32, i32, i32) {
    %c0_i32 = arith.constant 0 : i32
    %c0_i32_0 = arith.constant 0 : i32
    %c0_i32_1 = arith.constant 0 : i32
    %c0_i32_2 = arith.constant 0 : i32
    return %arg0, %c0_i32, %c0_i32_0, %c0_i32_1 : i32, i32, i32, i32
  }
  func.func @transform_3(%arg0: i32) -> (i32, i32, i32) {
    %c0_i32 = arith.constant 0 : i32
    %c0_i32_0 = arith.constant 0 : i32
    %c0_i32_1 = arith.constant 0 : i32
    %c0_i32_2 = arith.constant 0 : i32
    return %c0_i32, %c0_i32_0, %c0_i32_1 : i32, i32, i32
  }
  func.func @transform_4(%arg0: i32) -> (i32, i32, i32) {
    %c0_i32 = arith.constant 0 : i32
    %c0_i32_0 = arith.constant 0 : i32
    %c0_i32_1 = arith.constant 0 : i32
    return %arg0, %c0_i32, %c0_i32_0 : i32, i32, i32
  }
}

</mosaic_0001>

<bundles_post_ra>
// kernel: sub.32
= control target key start
LH: loop header
LB: loop body
LE: loop exit
PB: predicated region body
PF: predicated region fallthrough
CT: control target
= control target key end

     0   :  { %s7_s6 = smov 3  ;;  %s21_s9 = smov 3  ;;  %vm4_vm0 = vcmask 31744   ;;  %vm11_vm1 = vcmask 261344   ;;  %vm18_vm2 = vcmask 228544   ;;  %vm25_vm3 = vcmask 195744   ;;  %s119_s0 = inlined_call_operand.vmem [shape: s32[2,8,4], index: 0, kind: input, shape index: {}]   ;;  %s120_s1 = inlined_call_operand.vmem [shape: s32[2,32], index: 1, kind: output, shape index: {}]  }
   0x1   :  { %v61_v0 = vld [vmem:[%s119_s0 + $0x7] ss:$8 sm:%s7_s6]   ;;  %s75_s10 = smov 28   ;;  %v63_v1 = vld [vmem:[%s119_s0 + $0x5] ss:$8 sm:%s21_s9]   ;;  %s14_s13 = smov 3 }
   0x2   :  { %9 = vrot.lane.b32.xlu0 %v61_v0, %s75_s10  ;;  %s76_s14 = smov 20   ;;  %v62_v2 = vld [vmem:[%s119_s0 + $0x6] ss:$8 sm:%s14_s13]   ;;  %s28_s17 = smov 3  ;;  %vm32_vm4 = vcmask 162944   ;;  %vm39_vm5 = vcmask 130144  }
   0x3   :  { %23 = vrot.lane.b32.xlu1 %v63_v1, %s76_s14  ;;  %v64_v3 = vld [vmem:[%s119_s0 + $0x4] ss:$8 sm:%s28_s17]   ;;  %s35_s20 = smov 3  ;;  %s42_s21 = smov 3  ;;  %vm46_vm6 = vcmask 97344   ;;  %vm53_vm7 = vcmask 64544  }
   0x4   :  { %s77_s22 = smov 24   ;;  %s78_s23 = smov 16   ;;  %v65_v4 = vld [vmem:[%s119_s0 + $0x3] ss:$8 sm:%s35_s20]   ;;  %v66_v5 = vld [vmem:[%s119_s0 + $0x2] ss:$8 sm:%s42_s21]  }
   0x5   :  { %s2_s26 = smov 3  ;;  %s49_s29 = smov 3 }
   0x6   :  { %16 = vrot.lane.b32.xlu0 %v62_v2, %s77_s22  ;;  %v3_v6 = vld [vmem:[%s119_s0] ss:$8 sm:%s2_s26]   ;;  %s79_s3 = smov 12   ;;  %s80_s4 = smov 8  }
   0x7   :  { %30 = vrot.lane.b32.xlu1 %v64_v3, %s78_s23  ;;  %5 = vst.msk [vmem:[#allocation0] sm:$0x3] %vm4_vm0, %v3_v6   ;;  %v67_v7 = vld [vmem:[%s119_s0 + $0x1] ss:$8 sm:%s49_s29]   ;;  %s81_s0 = smov 4  }
   0xa   :  { %37 = vrot.lane.b32.xlu0 %v65_v4, %s79_s3 }
   0xb   :  { %44 = vrot.lane.b32.xlu1 %v66_v5, %s80_s4 }
   0xe   :  { %51 = vrot.lane.b32.xlu0 %v67_v7, %s81_s0 }
  0x74   :  { %v10_v8 = vpop.permute.xlu0 %9  }
  0x75   :  { %12 = vst.msk [vmem:[#allocation0] sm:$0x3] %vm11_vm1, %v10_v8   ;;  %v24_v9 = vpop.permute.xlu1 %23  }
  0x78   :  { %v17_v10 = vpop.permute.xlu0 %16  }
  0x79   :  { %19 = vst.msk [vmem:[#allocation0] sm:$0x3] %vm18_vm2, %v17_v10   ;;  %v31_v11 = vpop.permute.xlu1 %30  }
  0x7a   :  { %26 = vst.msk [vmem:[#allocation0] sm:$0x3] %vm25_vm3, %v24_v9  }
  0x7b   :  { %33 = vst.msk [vmem:[#allocation0] sm:$0x3] %vm32_vm4, %v31_v11  }
  0x7c   :  { %v38_v12 = vpop.permute.xlu0 %37  }
  0x7d   :  { %40 = vst.msk [vmem:[#allocation0] sm:$0x3] %vm39_vm5, %v38_v12   ;;  %v45_v13 = vpop.permute.xlu1 %44  }
  0x7e   :  { %47 = vst.msk [vmem:[#allocation0] sm:$0x3] %vm46_vm6, %v45_v13  }
  0x80   :  { %v52_v14 = vpop.permute.xlu0 %51  }
  0x81   :  { %54 = vst.msk [vmem:[#allocation0] sm:$0x3] %vm53_vm7, %v52_v14  }
  0x88   :  { %v58_v15 = vld [vmem:[#allocation0] sm:$0x3] }
  0x89   :  { %60 = vst [vmem:[%s120_s1] sm:$0x3] %v58_v15 }

// kernel: spatial_domain_forward.1
= control target key start
LH: loop header
LB: loop body
LE: loop exit
PB: predicated region body
PF: predicated region fallthrough
CT: control target
= control target key end

     0   :  { %s2727_s15 = smov 0   ;;  %s3366_s0 = inlined_call_operand.vmem [shape: bf16[4,4,32,16], index: 0, kind: input, shape index: {}]   ;;  %s3367_s1 = inlined_call_operand.vmem [shape: bf16[4,4,16,32], index: 1, kind: input, shape index: {}]   ;;  %s3368_s2 = inlined_call_operand.vmem [shape: bf16[4,4,32,16], index: 2, kind: input, shape index: {}]   ;;  %s3369_s3 = inlined_call_operand.vmem [shape: f32[4,32,32], index: 3, kind: input, shape index: {}]   ;;  %s3370_s4 = inlined_call_operand.vmem [shape: bf16[4,32,64], index: 4, kind: output, shape index: {}]  }
   0x1 LB: > { %s2185_s16 = sadd.s32 4294967295, %s2697_s15   ;;  %p2189_p0 = scmp.ge.s32.totalorder %s2697_s15, 1  ;;  %s2697_s15 = sphi %s2727_s15, %s14_s15  }
   0x2   : > { %p188_p1 = scmp.lt.s32.totalorder %s2697_s15, 3 }
   0x4   : > { %p189_p2 = pnand %p2189_p0, %p188_p1 }
   0x5   : > { %s2190_s17 = sshll.u32 (!%p189_p2), %s2185_s16, 1  ;;  %vm353_vm0 = vcmask (!%p189_p2), 130048   ;;  %v2801_v25 = vld [vmem:[%s3369_s3 + $0x10] sm:$0xff] (!%p189_p2)  ;;  %vm986_vm1 = vcmask (!%p189_p2), 261120   ;;  %v2811_v34 = vld [vmem:[%s3369_s3 + $0x18] sm:$0xff] (!%p189_p2)  ;;  %v2819_v39 = vld [vmem:[%s3369_s3] sm:$0xff] (!%p189_p2) }
   0x6   : > { %192 = sbr.rel (%p189_p2) target bundleno = 954 (0x3ba), region = 36  ;;  %p229_p3 = scmp.lt.s32.totalorder (!%p189_p2), %s2190_s17, 3  ;;  %v2806_v29 = vld [vmem:[%s3369_s3 + $0x30] sm:$0xff] (!%p189_p2)  ;;  %v2837_v48 = vld [vmem:[%s3369_s3 + $0x38] sm:$0xff] (!%p189_p2)  ;;  %v2842_v49 = vld [vmem:[%s3369_s3 + $0x20] sm:$0xff] (!%p189_p2)  ;;  %vm1923_vm2 = vcmask (!%p189_p2), 125952  }
   0x7   : > { %v2857_v60 = vld [vmem:[%s3369_s3 + $0x28] sm:$0xff] (!%p189_p2)  ;;  %s2700_s16 = smov (!%p189_p2), 32   ;;  %vm1980_vm3 = vcmask (!%p189_p2), 257152   ;;  %vm2037_vm4 = vcmask (!%p189_p2), 388352   ;;  %vm2094_vm5 = vcmask (!%p189_p2), 519552  }
   0x8   : > { %v2862_v63 = vld [vmem:[%s3369_s3 + $0x8] sm:$0xff] (!%p189_p2) }
   0xd   : > { %s3372_s17 = smov (!%p229_p3, %s2190_s17), 3 }
   0xe   : > { %s2308_s18 = sshll.u32 %s3372_s17, 6  ;;  %s2309_s19 = sshll.u32 %s3372_s17, 5 }
   0xf   : > { %s2744_s22 = scalar_lea.vmem %s3366_s0, %s2308_s18  ;;  %s2749_s25 = scalar_lea.vmem %s3367_s1, %s2309_s19 }
  0x10   : > { %v2523_v0 = vld [vmem:[%s2749_s25] sm:$0xff]   ;;  %v2524_v1 = vld [vmem:[%s2749_s25 + $0x8] sm:$0xff]   ;;  %v2526_v3 = vld [vmem:[%s2744_s22 + $0x10] sm:$0xff]   ;;  %s2789_s28 = scalar_lea.vmem %s3368_s2, %s2308_s18  ;;  %s2701_s18 = smov 48  }
  0x11   : > { %2400 = vmatprep.subr.bf16.mxu0 %v2523_v0  ;;  %v2525_v2 = vld [vmem:[%s2744_s22] sm:$0xff]   ;;  %2406 = vmatprep.subr.bf16.mxu1 %v2524_v1  ;;  %v2527_v4 = vld [vmem:[%s2744_s22 + $0x8] sm:$0xff]   ;;  %v2528_v5 = vld [vmem:[%s2744_s22 + $0x18] sm:$0xff]  }
  0x12   : > { %2401 = vmatpush3.bf16.msra.mxu0 %v2523_v0  ;;  %2407 = vmatpush3.bf16.msra.mxu1 %v2524_v1  ;;  %v2529_v6 = vld [vmem:[%s2749_s25 + $0x10] sm:$0xff]   ;;  %v2530_v7 = vld [vmem:[%s2744_s22 + $0x20] sm:$0xff]   ;;  %v2531_v8 = vld [vmem:[%s2749_s25 + $0x18] sm:$0xff]  }
  0x13   : > { %2402 = vmatprep.mubr.msk.bf16.mxu0 %vm353_vm0, %v2525_v2  ;;  %2408 = vmatprep.mubr.msk.bf16.mxu1 %vm353_vm0, %v2526_v3  ;;  %v2532_v9 = vld [vmem:[%s2744_s22 + $0x28] sm:$0xff]   ;;  %v2533_v10 = vld [vmem:[%s2744_s22 + $0x30] sm:$0xff]   ;;  %v2534_v11 = vld [vmem:[%s2744_s22 + $0x38] sm:$0xff]  }
  0x14   : > { %2412 = vmatprep.subr.bf16.mxu0 %v2529_v6  ;;  %2418 = vmatprep.subr.bf16.mxu1 %v2531_v8  ;;  %v2535_v12 = vld [vmem:[%s2749_s25 + $0x20] sm:$0xff]   ;;  %v2537_v14 = vld [vmem:[%s2749_s25 + $0x28] sm:$0xff]   ;;  %v2539_v15 = vld [vmem:[%s2744_s22 + $0x50] sm:$0xff]  }
  0x15   : > { %2403 = vmatmul.mubr.msk.bf16.vlgmr.msra.gmra.mrb[0].mxu0 %vm353_vm0, %v2527_v4  ;;  %2409 = vmatmul.mubr.msk.bf16.vlgmr.msra.gmra.mrb[0].mxu1 %vm353_vm0, %v2528_v5  ;;  %v2536_v13 = vld [vmem:[%s2744_s22 + $0x40] sm:$0xff]   ;;  %v2538_v16 = vld [vmem:[%s2744_s22 + $0x48] sm:$0xff]   ;;  %v2541_v17 = vld [vmem:[%s2749_s25 + $0x30] sm:$0xff]  }
  0x16   : > { %2413 = vmatpush3.bf16.msra.mxu0 %v2529_v6  ;;  %2414 = vmatprep.mubr.msk.bf16.mxu0 %vm353_vm0, %v2530_v7  ;;  %v2540_v18 = vld [vmem:[%s2744_s22 + $0x58] sm:$0xff]   ;;  %v2542_v19 = vld [vmem:[%s2744_s22 + $0x60] sm:$0xff]   ;;  %v2545_v21 = vld [vmem:[%s2744_s22 + $0x70] sm:$0xff]  }
  0x17   : > { %2419 = vmatpush3.bf16.msra.mxu1 %v2531_v8  ;;  %2420 = vmatprep.mubr.msk.bf16.mxu1 %vm353_vm0, %v2533_v10  ;;  %v2544_v20 = vld [vmem:[%s2749_s25 + $0x38] sm:$0xff]   ;;  %v2543_v22 = vld [vmem:[%s2744_s22 + $0x68] sm:$0xff]   ;;  %v2877_v7 = vld [vmem:[%s3369_s3 + $0x50] sm:$0xff] }
  0x18   : > { %2424 = vmatprep.subr.bf16.mxu0 %v2535_v12  ;;  %2430 = vmatprep.subr.bf16.mxu1 %v2537_v14  ;;  %v2546_v23 = vld [vmem:[%s2744_s22 + $0x78] sm:$0xff]  }
  0x19   : > { %v2867_v4 = vld [vmem:[%s3369_s3 + $0x58] sm:$0xff] }
  0x1d   : > { %2415 = vmatmul.mubr.msk.bf16.vlgmr.msra.gmra.mrb[4].mxu0 %vm353_vm0, %v2532_v9  ;;  %2421 = vmatmul.mubr.msk.bf16.vlgmr.msra.gmra.mrb[4].mxu1 %vm353_vm0, %v2534_v11 }
  0x1e   : > { %2425 = vmatpush3.bf16.msra.mxu0 %v2535_v12  ;;  %2426 = vmatprep.mubr.msk.bf16.mxu0 %vm353_vm0, %v2536_v13 }
  0x1f   : > { %2431 = vmatpush3.bf16.msra.mxu1 %v2537_v14  ;;  %2432 = vmatprep.mubr.msk.bf16.mxu1 %vm353_vm0, %v2539_v15  ;;  %v2893_v14 = vld [vmem:[%s3369_s3 + $0x78] sm:$0xff] }
  0x20   : > { %2436 = vmatprep.subr.bf16.mxu0 %v2541_v17  ;;  %2442 = vmatprep.subr.bf16.mxu1 %v2544_v20 }
  0x25   : > { %2427 = vmatmul.mubr.msk.bf16.vlgmr.msra.gmra.mrb[8].mxu0 %vm353_vm0, %v2538_v16  ;;  %2433 = vmatmul.mubr.msk.bf16.vlgmr.msra.gmra.mrb[8].mxu1 %vm353_vm0, %v2540_v18 }
  0x26   : > { %2437 = vmatpush3.bf16.msra.mxu0 %v2541_v17  ;;  %2438 = vmatprep.mubr.msk.bf16.mxu0 %vm353_vm0, %v2542_v19  ;;  %v2900_v17 = vld [vmem:[%s3369_s3 + $0x70] sm:$0xff] }
  0x27   : > { %2443 = vmatpush3.bf16.msra.mxu1 %v2544_v20  ;;  %2444 = vmatprep.mubr.msk.bf16.mxu1 %vm353_vm0, %v2545_v21 }
  0x2d   : > { %2439 = vmatmul.mubr.msk.bf16.vlgmr.msra.gmra.mrb[12].mxu0 %vm353_vm0, %v2543_v22  ;;  %2445 = vmatmul.mubr.msk.bf16.vlgmr.msra.gmra.mrb[12].mxu1 %vm353_vm0, %v2546_v23 }
  0xe8   : > { %v2404_v24 = vpop.f32.mrb[0].mxu0  ;;  %v2410_v27 = vpop.f32.mrb[0].mxu1 }
  0xe9   : > { %v908_v26 = vmul.f32 0.25, %v2404_v24  ;;  %v394_v28 = vpop.f32.mrb[1].mxu0  ;;  %v912_v30 = vmul.f32 0.25, %v2410_v27  ;;  %v465_v32 = vpop.f32.mrb[1].mxu1 }
  0xea   : > { %v906_v31 = vmul.f32 0.25, %v394_v28  ;;  %v2405_v33 = vpop.f32.mrb[2].mxu0  ;;  %v2411_v36 = vpop.f32.mrb[2].mxu1  ;;  %v910_v45 = vmul.f32 0.25, %v465_v32 }
  0xeb   : > { %v909_v35 = vmul.f32 0.25, %v2405_v33  ;;  %v397_v37 = vpop.f32.mrb[3].mxu0  ;;  %v2814_v38 = vadd.f32 %v2801_v25, %v908_v26  ;;  %v468_v40 = vpop.f32.mrb[3].mxu1  ;;  %v2822_v41 = vadd.f32 %v2806_v29, %v912_v30  ;;  %v913_v42 = vmul.f32 0.25, %v2411_v36 }
  0xec   : > { %v2832_v47 = vadd.f32 %v2819_v39, %v906_v31  ;;  %v911_v51 = vmul.f32 0.25, %v468_v40  ;;  %v907_v56 = vmul.f32 0.25, %v397_v37  ;;  %v2852_v58 = vadd.f32 %v2842_v49, %v910_v45  ;;  %v2924_v37 = vld [vmem:[%s3369_s3 + $0x40] sm:$0xff] }
  0xed   : > { %v993_v43 = vsel %vm986_vm1, %v2814_v38, -inf  ;;  %v2827_v44 = vadd.f32 %v2811_v34, %v909_v35  ;;  %v1005_v46 = vsel %vm986_vm1, %v2822_v41, -inf  ;;  %v2847_v53 = vadd.f32 %v2837_v48, %v913_v42  ;;  %v2917_v35 = vld [vmem:[%s3369_s3 + $0x48] sm:$0xff] }
  0xee   : > { %994 = vmax.xlane.f32.xlu1 %v993_v43  ;;  %1006 = vmax.xlane.f32.xlu0 %v1005_v46  ;;  %v987_v57 = vsel %vm986_vm1, %v2832_v47, -inf  ;;  %v2872_v6 = vadd.f32 %v2857_v60, %v911_v51  ;;  %v999_v8 = vsel %vm986_vm1, %v2852_v58, -inf  ;;  %v2882_v9 = vadd.f32 %v2862_v63, %v907_v56 }
  0xef   : > { %v996_v52 = vsel %vm986_vm1, %v2827_v44, -inf  ;;  %v1008_v5 = vsel %vm986_vm1, %v2847_v53, -inf }
  0xf0   : > { %v2416_v50 = vpop.f32.mrb[4].mxu0  ;;  %v2422_v55 = vpop.f32.mrb[4].mxu1  ;;  %v1002_v16 = vsel %vm986_vm1, %v2872_v6, -inf  ;;  %v990_v20 = vsel %vm986_vm1, %v2882_v9, -inf }
  0xf1   : > { %v536_v54 = vpop.f32.mrb[5].mxu0  ;;  %v607_v61 = vpop.f32.mrb[5].mxu1  ;;  %v916_v2 = vmul.f32 0.25, %v2416_v50  ;;  %v920_v12 = vmul.f32 0.25, %v2422_v55 }
  0xf2   : > { %997 = vmax.xlane.f32.xlu1 %v996_v52  ;;  %v2417_v59 = vpop.f32.mrb[6].mxu0  ;;  %988 = vmax.xlane.f32.xlu0 %v987_v57  ;;  %v2423_v1 = vpop.f32.mrb[6].mxu1  ;;  %v914_v33 = vmul.f32 0.25, %v536_v54  ;;  %v918_v51 = vmul.f32 0.25, %v607_v61  ;;  %v2939_v54 = vld [vmem:[%s3369_s3 + $0x68] sm:$0xff] }
  0xf3   : > { %v917_v62 = vmul.f32 0.25, %v2417_v59  ;;  %v539_v0 = vpop.f32.mrb[7].mxu0  ;;  %v610_v3 = vpop.f32.mrb[7].mxu1  ;;  %v921_v10 = vmul.f32 0.25, %v2423_v1  ;;  %v2888_v13 = vadd.f32 %v2877_v7, %v916_v2  ;;  %v2912_v30 = vadd.f32 %v2900_v17, %v920_v12  ;;  %v950_v59 = vld [vmem:[%s3369_s3 + $0x60] sm:$0xff] }
  0xf4   : > { %v915_v32 = vmul.f32 0.25, %v539_v0  ;;  %v919_v43 = vmul.f32 0.25, %v610_v3  ;;  %v2934_v52 = vadd.f32 %v2924_v37, %v914_v33 }
  0xf5   : > { %v2885_v11 = vadd.f32 %v2867_v4, %v917_v62  ;;  %v2907_v24 = vadd.f32 %v2893_v14, %v921_v10  ;;  %v1017_v28 = vsel %vm986_vm1, %v2888_v13, -inf  ;;  %v1029_v40 = vsel %vm986_vm1, %v2912_v30, -inf }
  0xf6   : > { %1009 = vmax.xlane.f32.xlu1 %v1008_v5  ;;  %1000 = vmax.xlane.f32.xlu0 %v999_v8  ;;  %v2929_v45 = vadd.f32 %v2917_v35, %v915_v32  ;;  %v2947_v3 = vadd.f32 %v2939_v54, %v919_v43  ;;  %v1011_v5 = vsel %vm986_vm1, %v2934_v52, -inf  ;;  %v2951_v8 = vadd.f32 %v950_v59, %v918_v51 }
  0xf7   : > { %v1020_v23 = vsel %vm986_vm1, %v2885_v11, -inf  ;;  %v1032_v36 = vsel %vm986_vm1, %v2907_v24, -inf }
  0xf8   : > { %v2428_v15 = vpop.f32.mrb[8].mxu0  ;;  %v2434_v19 = vpop.f32.mrb[8].mxu1  ;;  %v1014_v2 = vsel %vm986_vm1, %v2929_v45, -inf }
  0xf9   : > { %v678_v18 = vpop.f32.mrb[9].mxu0  ;;  %v749_v22 = vpop.f32.mrb[9].mxu1  ;;  %v924_v61 = vmul.f32 0.25, %v2428_v15 }
  0xfa   : > { %1003 = vmax.xlane.f32.xlu1 %v1002_v16  ;;  %v2429_v21 = vpop.f32.mrb[10].mxu0  ;;  %991 = vmax.xlane.f32.xlu0 %v990_v20  ;;  %v2435_v27 = vpop.f32.mrb[10].mxu1  ;;  %v928_v16 = vmul.f32 0.25, %v2434_v19  ;;  %v1026_v20 = vsel %vm986_vm1, %v2947_v3, -inf }
  0xfb   : > { %v681_v26 = vpop.f32.mrb[11].mxu0  ;;  %v752_v31 = vpop.f32.mrb[11].mxu1  ;;  %v925_v57 = vmul.f32 0.25, %v2429_v21  ;;  %v929_v10 = vmul.f32 0.25, %v2435_v27  ;;  %v2957_v15 = vadd.f32 %v2801_v25, %v924_v61  ;;  %v1023_v21 = vsel %vm986_vm1, %v2951_v8, -inf }
  0xfc   : > { %v2971_v25 = vadd.f32 %v2806_v29, %v928_v16  ;;  %v923_v19 = vmul.f32 0.25, %v681_v26 }
  0xfd   : > { %v2954_v12 = vadd.f32 %v2811_v34, %v925_v57  ;;  %v2966_v27 = vadd.f32 %v2837_v48, %v929_v10  ;;  %v1041_v34 = vsel %vm986_vm1, %v2957_v15, -inf }
  0xfe   : > { %1021 = vmax.xlane.f32.xlu1 %v1020_v23  ;;  %1018 = vmax.xlane.f32.xlu0 %v1017_v28  ;;  %v922_v28 = vmul.f32 0.25, %v678_v18  ;;  %v1053_v33 = vsel %vm986_vm1, %v2971_v25, -inf  ;;  %v2978_v48 = vadd.f32 %v2862_v63, %v923_v19 }
  0xff   : > { %v1044_v23 = vsel %vm986_vm1, %v2954_v12, -inf  ;;  %v1056_v32 = vsel %vm986_vm1, %v2966_v27, -inf }
 0x100   : > { %v2440_v42 = vpop.f32.mrb[12].mxu0  ;;  %v2931_v50 = vpop.f32.mrb[12].mxu1  ;;  %v2981_v43 = vadd.f32 %v2819_v39, %v922_v28  ;;  %v1038_v26 = vsel %vm986_vm1, %v2978_v48, -inf }
 0x101   : > { %v820_v46 = vpop.f32.mrb[13].mxu0  ;;  %v891_v56 = vpop.f32.mrb[13].mxu1  ;;  %v932_v18 = vmul.f32 0.25, %v2440_v42 }
 0x102   : > { %1033 = vmax.xlane.f32.xlu1 %v1032_v36  ;;  %v2441_v55 = vpop.f32.mrb[14].mxu0  ;;  %1030 = vmax.xlane.f32.xlu0 %v1029_v40  ;;  %v2447_v0 = vpop.f32.mrb[14].mxu1  ;;  %v927_v36 = vmul.f32 0.25, %v752_v31  ;;  %v926_v40 = vmul.f32 0.25, %v749_v22  ;;  %v1035_v31 = vsel %vm986_vm1, %v2981_v43, -inf }
 0x103   : > { %v823_v62 = vpop.f32.mrb[15].mxu0  ;;  %v894_v1 = vpop.f32.mrb[15].mxu1  ;;  %v933_v29 = vmul.f32 0.25, %v2441_v55  ;;  %v2997_v22 = vadd.f32 %v2877_v7, %v932_v18  ;;  %v937_v10 = vmul.f32 0.25, %v2447_v0 }
 0x104   : > { %v2986_v51 = vadd.f32 %v2857_v60, %v927_v36  ;;  %v2991_v63 = vadd.f32 %v2842_v49, %v926_v40  ;;  %v931_v55 = vmul.f32 0.25, %v823_v62  ;;  %v930_v60 = vmul.f32 0.25, %v820_v46 }
 0x105   : > { %v2994_v39 = vadd.f32 %v2867_v4, %v933_v29  ;;  %v935_v61 = vmul.f32 0.25, %v894_v1  ;;  %v1065_v4 = vsel %vm986_vm1, %v2997_v22, -inf  ;;  %v936_v1 = vmul.f32 0.25, %v2931_v50 }
 0x106   : > { %1015 = vmax.xlane.f32.xlu1 %v1014_v2  ;;  %1012 = vmax.xlane.f32.xlu0 %v1011_v5  ;;  %v1050_v42 = vsel %vm986_vm1, %v2986_v51, -inf  ;;  %v1047_v57 = vsel %vm986_vm1, %v2991_v63, -inf  ;;  %v934_v2 = vmul.f32 0.25, %v891_v56  ;;  %v3008_v7 = vadd.f32 %v2917_v35, %v931_v55 }
 0x107   : > { %v1068_v49 = vsel %vm986_vm1, %v2994_v39, -inf  ;;  %v3011_v62 = vadd.f32 %v2924_v37, %v930_v60  ;;  %v3014_v46 = vadd.f32 %v2939_v54, %v935_v61  ;;  %v3031_v0 = vadd.f32 %v2900_v17, %v936_v1 }
 0x108   : > { %v3016_v5 = vadd.f32 %v950_v59, %v934_v2  ;;  %v1062_v56 = vsel %vm986_vm1, %v3008_v7, -inf  ;;  %v3028_v59 = vadd.f32 %v2893_v14, %v937_v10 }
 0x109   : > { %v1059_v35 = vsel %vm986_vm1, %v3011_v62, -inf  ;;  %v1074_v37 = vsel %vm986_vm1, %v3014_v46, -inf  ;;  %v1077_v16 = vsel %vm986_vm1, %v3031_v0, -inf }
 0x10a   : > { %1027 = vmax.xlane.f32.xlu1 %v1026_v20  ;;  %1024 = vmax.xlane.f32.xlu0 %v1023_v21  ;;  %v1071_v54 = vsel %vm986_vm1, %v3016_v5, -inf  ;;  %v1080_v50 = vsel %vm986_vm1, %v3028_v59, -inf }
 0x10e   : > { %1045 = vmax.xlane.f32.xlu1 %v1044_v23  ;;  %1042 = vmax.xlane.f32.xlu0 %v1041_v34 }
 0x112   : > { %1057 = vmax.xlane.f32.xlu1 %v1056_v32  ;;  %1054 = vmax.xlane.f32.xlu0 %v1053_v33 }
 0x116   : > { %1039 = vmax.xlane.f32.xlu1 %v1038_v26  ;;  %1036 = vmax.xlane.f32.xlu0 %v1035_v31 }
 0x11a   : > { %1051 = vmax.xlane.f32.xlu1 %v1050_v42  ;;  %1048 = vmax.xlane.f32.xlu0 %v1047_v57 }
 0x11e   : > { %1069 = vmax.xlane.f32.xlu1 %v1068_v49  ;;  %1066 = vmax.xlane.f32.xlu0 %v1065_v4 }
 0x122   : > { %1063 = vmax.xlane.f32.xlu1 %v1062_v56  ;;  %1060 = vmax.xlane.f32.xlu0 %v1059_v35 }
 0x126   : > { %1075 = vmax.xlane.f32.xlu1 %v1074_v37  ;;  %1072 = vmax.xlane.f32.xlu0 %v1071_v54 }
 0x12a   : > { %1081 = vmax.xlane.f32.xlu1 %v1080_v50  ;;  %1078 = vmax.xlane.f32.xlu0 %v1077_v16 }
 0x17b   : > { %v995_v20 = vpop.xlane.xlu1 %994  ;;  %v1007_v21 = vpop.xlane.xlu0 %1006 }
 0x17c   : > { %v1085_v23 = vsub.f32 %v2814_v38, %v995_v20  ;;  %v1089_v14 = vsub.f32 %v2822_v41, %v1007_v21 }
 0x17e   : > { %v1119_v34 = vmul.f32 1.442695, %v1085_v23  ;;  %v1127_v19 = vmul.f32 1.442695, %v1089_v14 }
 0x17f   : > { %v998_v28 = vpop.xlane.xlu1 %997  ;;  %v989_v17 = vpop.xlane.xlu0 %988 }
 0x180   : > { %2563 = vpow2.f32 %v1119_v34  ;;  %v1086_v32 = vsub.f32 %v2827_v44, %v998_v28  ;;  %v1083_v33 = vsub.f32 %v2832_v47, %v989_v17 }
 0x181   : > { %2565 = vpow2.f32 %v1127_v19 }
 0x182   : > { %v1121_v36 = vmul.f32 1.442695, %v1086_v32  ;;  %v1115_v40 = vmul.f32 1.442695, %v1083_v33 }
 0x183   : > { %v1010_v29 = vpop.xlane.xlu1 %1009  ;;  %v1001_v18 = vpop.xlane.xlu0 %1000 }
 0x184   : > { %2567 = vpow2.f32 %v1121_v36  ;;  %v1090_v26 = vsub.f32 %v2847_v53, %v1010_v29  ;;  %v1087_v38 = vsub.f32 %v2852_v58, %v1001_v18 }
 0x185   : > { %2569 = vpow2.f32 %v1115_v40 }
 0x186   : > { %v1129_v41 = vmul.f32 1.442695, %v1090_v26  ;;  %v1123_v31 = vmul.f32 1.442695, %v1087_v38 }
 0x187   : > { %v1004_v42 = vpop.xlane.xlu1 %1003  ;;  %v992_v44 = vpop.xlane.xlu0 %991 }
 0x188   : > { %2571 = vpow2.f32 %v1129_v41  ;;  %v1088_v55 = vsub.f32 %v2872_v6, %v1004_v42  ;;  %v1084_v47 = vsub.f32 %v2882_v9, %v992_v44 }
 0x189   : > { %2573 = vpow2.f32 %v1123_v31 }
 0x18a   : > { %v3045_v60 = vpop.eup %2563  ;;  %v1125_v57 = vmul.f32 1.442695, %v1088_v55  ;;  %v1117_v49 = vmul.f32 1.442695, %v1084_v47 }
 0x18b   : > { %v1022_v61 = vpop.xlane.xlu1 %1021  ;;  %v1185_v53 = vsel %vm986_vm1, %v3045_v60, 0.0  ;;  %v3049_v58 = vpop.eup %2565 }
 0x18c   : > { %v1019_v2 = vpop.xlane.xlu0 %1018  ;;  %v1094_v4 = vsub.f32 %v2885_v11, %v1022_v61  ;;  %1186 = vadd.xlane.f32.xlu0 %v1185_v53  ;;  %2575 = vpow2.f32 %v1117_v49  ;;  %v1197_v35 = vsel %vm986_vm1, %v3049_v58, 0.0 }
 0x18d   : > { %v1093_v6 = vsub.f32 %v2888_v13, %v1019_v2  ;;  %2577 = vpow2.f32 %v1125_v57 }
 0x18e   : > { %v3053_v10 = vpop.eup %2567  ;;  %v1137_v9 = vmul.f32 1.442695, %v1094_v4 }
 0x18f   : > { %v1135_v56 = vmul.f32 1.442695, %v1093_v6  ;;  %v1034_v1 = vpop.xlane.xlu1 %1033  ;;  %v1188_v37 = vsel %vm986_vm1, %v3053_v10, 0.0  ;;  %v3059_v54 = vpop.eup %2569 }
 0x190   : > { %v1031_v50 = vpop.xlane.xlu0 %1030  ;;  %v1098_v11 = vsub.f32 %v2907_v24, %v1034_v1  ;;  %1198 = vadd.xlane.f32.xlu0 %v1197_v35  ;;  %1189 = vadd.xlane.f32.xlu1 %v1188_v37  ;;  %v1179_v14 = vsel %vm986_vm1, %v3059_v54, 0.0 }
 0x191   : > { %2579 = vpow2.f32 %v1135_v56  ;;  %v1097_v13 = vsub.f32 %v2912_v30, %v1031_v50 }
 0x192   : > { %v3063_v16 = vpop.eup %2571  ;;  %2581 = vpow2.f32 %v1137_v9  ;;  %v1145_v21 = vmul.f32 1.442695, %v1098_v11 }
 0x193   : > { %v1143_v20 = vmul.f32 1.442695, %v1097_v13  ;;  %v1016_v23 = vpop.xlane.xlu1 %1015  ;;  %v1200_v34 = vsel %vm986_vm1, %v3063_v16, 0.0  ;;  %v3069_v19 = vpop.eup %2573 }
 0x194   : > { %v1013_v24 = vpop.xlane.xlu0 %1012  ;;  %v1092_v28 = vsub.f32 %v2929_v45, %v1016_v23  ;;  %1180 = vadd.xlane.f32.xlu0 %v1179_v14  ;;  %1201 = vadd.xlane.f32.xlu1 %v1200_v34  ;;  %v1191_v40 = vsel %vm986_vm1, %v3069_v19, 0.0 }
 0x195   : > { %2583 = vpow2.f32 %v1143_v20  ;;  %v1091_v30 = vsub.f32 %v2934_v52, %v1013_v24 }
 0x196   : > { %v3073_v17 = vpop.eup %2575  ;;  %2585 = vpow2.f32 %v1145_v21  ;;  %v1133_v33 = vmul.f32 1.442695, %v1092_v28 }
 0x197   : > { %v1131_v32 = vmul.f32 1.442695, %v1091_v30  ;;  %v1028_v36 = vpop.xlane.xlu1 %1027  ;;  %v1182_v45 = vsel %vm986_vm1, %v3073_v17, 0.0  ;;  %v3080_v26 = vpop.eup %2577 }
 0x198   : > { %v1025_v29 = vpop.xlane.xlu0 %1024  ;;  %v1096_v18 = vsub.f32 %v2947_v3, %v1028_v36  ;;  %1192 = vadd.xlane.f32.xlu0 %v1191_v40  ;;  %1183 = vadd.xlane.f32.xlu1 %v1182_v45  ;;  %v1194_v57 = vsel %vm986_vm1, %v3080_v26, 0.0 }
 0x199   : > { %2587 = vpow2.f32 %v1131_v32  ;;  %v1095_v52 = vsub.f32 %v2951_v8, %v1025_v29 }
 0x19a   : > { %2589 = vpow2.f32 %v1133_v33  ;;  %v1141_v31 = vmul.f32 1.442695, %v1096_v18 }
 0x19b   : > { %v3083_v38 = vpop.eup %2579  ;;  %v1139_v41 = vmul.f32 1.442695, %v1095_v52  ;;  %v1046_v42 = vpop.xlane.xlu1 %1045 }
 0x19c   : > { %v3085_v55 = vpop.eup %2581  ;;  %v1043_v44 = vpop.xlane.xlu0 %1042  ;;  %v1102_v3 = vsub.f32 %v2954_v12, %v1046_v42  ;;  %v1209_v47 = vsel %vm986_vm1, %v3083_v38, 0.0  ;;  %1195 = vadd.xlane.f32.xlu1 %v1194_v57  ;;  %v2547_v42 = vld [vmem:[%s2789_s28] sm:$0xff]  }
 0x19d   : > { %2591 = vpow2.f32 %v1139_v41  ;;  %v1101_v8 = vsub.f32 %v2957_v15, %v1043_v44  ;;  %1210 = vadd.xlane.f32.xlu0 %v1209_v47  ;;  %v1212_v9 = vsel %vm986_vm1, %v3085_v55, 0.0  ;;  %2448 = vmatprep.subr.bf16.mxu0 %v2547_v42 }
 0x19e   : > { %2593 = vpow2.f32 %v1141_v31  ;;  %v1153_v53 = vmul.f32 1.442695, %v1102_v3  ;;  %2449 = vmatpush3.bf16.msra.mxu0 %v2547_v42 }
 0x19f   : > { %v3093_v49 = vpop.eup %2583  ;;  %v1151_v61 = vmul.f32 1.442695, %v1101_v8  ;;  %v1058_v2 = vpop.xlane.xlu1 %1057 }
 0x1a0   : > { %v1055_v4 = vpop.xlane.xlu0 %1054  ;;  %v1106_v12 = vsub.f32 %v2966_v27, %v1058_v2  ;;  %v1221_v6 = vsel %vm986_vm1, %v3093_v49, 0.0  ;;  %v3100_v56 = vpop.eup %2585  ;;  %1213 = vadd.xlane.f32.xlu1 %v1212_v9 }
 0x1a1   : > { %2595 = vpow2.f32 %v1151_v61  ;;  %v1105_v15 = vsub.f32 %v2971_v25, %v1055_v4  ;;  %1222 = vadd.xlane.f32.xlu0 %v1221_v6  ;;  %v1224_v20 = vsel %vm986_vm1, %v3100_v56, 0.0  ;;  %v2548_v4 = vld [vmem:[%s2789_s28 + $0x8] sm:$0xff]  }
 0x1a2   : > { %2597 = vpow2.f32 %v1153_v53  ;;  %v1161_v37 = vmul.f32 1.442695, %v1106_v12  ;;  %v2549_v12 = vld [vmem:[%s2789_s28 + $0x10] sm:$0xff]   ;;  %2450 = vmatprep.subr.bf16.mxu0 %v2548_v4 }
 0x1a3   : > { %v3103_v1 = vpop.eup %2587  ;;  %v1159_v35 = vmul.f32 1.442695, %v1105_v15  ;;  %v1040_v50 = vpop.xlane.xlu1 %1039  ;;  %2456 = vmatprep.subr.bf16.mxu1 %v2549_v12  ;;  %2451 = vmatpush3.bf16.msra.mxu0 %v2548_v4 }
 0x1a4   : > { %v1037_v27 = vpop.xlane.xlu0 %1036  ;;  %v1100_v11 = vsub.f32 %v2978_v48, %v1040_v50  ;;  %v1203_v13 = vsel %vm986_vm1, %v3103_v1, 0.0  ;;  %v3110_v21 = vpop.eup %2589  ;;  %1225 = vadd.xlane.f32.xlu1 %v1224_v20  ;;  %2457 = vmatpush3.bf16.msra.mxu1 %v2549_v12 }
 0x1a5   : > { %2599 = vpow2.f32 %v1159_v35  ;;  %v1099_v25 = vsub.f32 %v2981_v43, %v1037_v27  ;;  %1204 = vadd.xlane.f32.xlu0 %v1203_v13  ;;  %v1206_v32 = vsel %vm986_vm1, %v3110_v21, 0.0  ;;  %v2550_v13 = vld [vmem:[%s2789_s28 + $0x18] sm:$0xff]  }
 0x1a6   : > { %2601 = vpow2.f32 %v1161_v37  ;;  %v1149_v34 = vmul.f32 1.442695, %v1100_v11  ;;  %2458 = vmatprep.subr.bf16.mxu1 %v2550_v13 }
 0x1a7   : > { %v3113_v23 = vpop.eup %2591  ;;  %v1147_v14 = vmul.f32 1.442695, %v1099_v25  ;;  %v1052_v24 = vpop.xlane.xlu1 %1051 }
 0x1a8   : > { %v1049_v48 = vpop.xlane.xlu0 %1048  ;;  %v1104_v28 = vsub.f32 %v2986_v51, %v1052_v24  ;;  %v1215_v30 = vsel %vm986_vm1, %v3113_v23, 0.0  ;;  %v3120_v33 = vpop.eup %2593  ;;  %1207 = vadd.xlane.f32.xlu1 %v1206_v32  ;;  %2459 = vmatpush3.bf16.msra.mxu1 %v2550_v13 }
 0x1a9   : > { %2603 = vpow2.f32 %v1147_v14  ;;  %v1103_v43 = vsub.f32 %v2991_v63, %v1049_v48  ;;  %1216 = vadd.xlane.f32.xlu0 %v1215_v30  ;;  %v1218_v41 = vsel %vm986_vm1, %v3120_v33, 0.0 }
 0x1aa   : > { %2605 = vpow2.f32 %v1149_v34  ;;  %v1157_v29 = vmul.f32 1.442695, %v1104_v28 }
 0x1ab   : > { %v3123_v36 = vpop.eup %2595  ;;  %v1155_v40 = vmul.f32 1.442695, %v1103_v43  ;;  %v1070_v51 = vpop.xlane.xlu1 %1069 }
 0x1ac   : > { %v1067_v18 = vpop.xlane.xlu0 %1066  ;;  %v1110_v45 = vsub.f32 %v2994_v39, %v1070_v51  ;;  %v1233_v52 = vsel %vm986_vm1, %v3123_v36, 0.0  ;;  %v3130_v31 = vpop.eup %2597  ;;  %1219 = vadd.xlane.f32.xlu1 %v1218_v41 }
 0x1ad   : > { %2607 = vpow2.f32 %v1155_v40  ;;  %v1109_v63 = vsub.f32 %v2997_v22, %v1067_v18  ;;  %1234 = vadd.xlane.f32.xlu0 %v1233_v52  ;;  %v1236_v22 = vsel %vm986_vm1, %v3130_v31, 0.0 }
 0x1ae   : > { %2609 = vpow2.f32 %v1157_v29  ;;  %v1169_v3 = vmul.f32 1.442695, %v1110_v45 }
 0x1af   : > { %v3134_v44 = vpop.eup %2599  ;;  %v1167_v39 = vmul.f32 1.442695, %v1109_v63  ;;  %v1064_v47 = vpop.xlane.xlu1 %1063  ;;  %v3188_v63 = vld [vmem:[%s2789_s28 + $0x30] sm:$0xff]  }
 0x1b0   : > { %v1061_v57 = vpop.xlane.xlu0 %1060  ;;  %v1108_v8 = vsub.f32 %v3008_v7, %v1064_v47  ;;  %v1245_v61 = vsel %vm986_vm1, %v3134_v44, 0.0  ;;  %v3141_v53 = vpop.eup %2601  ;;  %1237 = vadd.xlane.f32.xlu1 %v1236_v22  ;;  %2472 = vmatprep.subr.bf16.mxu1 %v3188_v63 }
 0x1b1   : > { %2611 = vpow2.f32 %v1167_v39  ;;  %v1107_v2 = vsub.f32 %v3011_v62, %v1061_v57  ;;  %1246 = vadd.xlane.f32.xlu0 %v1245_v61  ;;  %v1248_v62 = vsel %vm986_vm1, %v3141_v53, 0.0 }
 0x1b2   : > { %2613 = vpow2.f32 %v1169_v3  ;;  %v1165_v9 = vmul.f32 1.442695, %v1108_v8 }
 0x1b3   : > { %v3146_v6 = vpop.eup %2603  ;;  %v1163_v7 = vmul.f32 1.442695, %v1107_v2  ;;  %v1076_v15 = vpop.xlane.xlu1 %1075 }
 0x1b4   : > { %v1073_v35 = vpop.xlane.xlu0 %1072  ;;  %v1112_v37 = vsub.f32 %v3014_v46, %v1076_v15  ;;  %v1227_v50 = vsel %vm986_vm1, %v3146_v6, 0.0  ;;  %v3153_v27 = vpop.eup %2605  ;;  %1249 = vadd.xlane.f32.xlu1 %v1248_v62 }
 0x1b5   : > { %2615 = vpow2.f32 %v1163_v7  ;;  %v1111_v11 = vsub.f32 %v3016_v5, %v1073_v35  ;;  %1228 = vadd.xlane.f32.xlu0 %v1227_v50  ;;  %v1230_v5 = vsel %vm986_vm1, %v3153_v27, 0.0 }
 0x1b6   : > { %2617 = vpow2.f32 %v1165_v9  ;;  %v1173_v25 = vmul.f32 1.442695, %v1112_v37 }
 0x1b7   : > { %v3157_v20 = vpop.eup %2607  ;;  %v1171_v46 = vmul.f32 1.442695, %v1111_v11  ;;  %v1082_v14 = vpop.xlane.xlu1 %1081 }
 0x1b8   : > { %v1079_v34 = vpop.xlane.xlu0 %1078  ;;  %v1114_v24 = vsub.f32 %v3028_v59, %v1082_v14  ;;  %v1239_v48 = vsel %vm986_vm1, %v3157_v20, 0.0  ;;  %v3164_v28 = vpop.eup %2609  ;;  %1231 = vadd.xlane.f32.xlu1 %v1230_v5 }
 0x1b9   : > { %2619 = vpow2.f32 %v1171_v46  ;;  %v1113_v30 = vsub.f32 %v3031_v0, %v1079_v34  ;;  %1240 = vadd.xlane.f32.xlu0 %v1239_v48  ;;  %v1242_v29 = vsel %vm986_vm1, %v3164_v28, 0.0  ;;  %v3176_v0 = vld [vmem:[%s2789_s28 + $0x20] sm:$0xff]  }
 0x1ba   : > { %2621 = vpow2.f32 %v1173_v25  ;;  %v1177_v43 = vmul.f32 1.442695, %v1114_v24  ;;  %2464 = vmatprep.subr.bf16.mxu0 %v3176_v0 }
 0x1bb   : > { %v3167_v32 = vpop.eup %2611  ;;  %v1175_v59 = vmul.f32 1.442695, %v1113_v30 }
 0x1bc   : > { %v1257_v40 = vsel %vm986_vm1, %v3167_v32, 0.0  ;;  %v3173_v51 = vpop.eup %2613  ;;  %1243 = vadd.xlane.f32.xlu1 %v1242_v29 }
 0x1bd   : > { %2623 = vpow2.f32 %v1175_v59  ;;  %1258 = vadd.xlane.f32.xlu0 %v1257_v40  ;;  %v1260_v52 = vsel %vm986_vm1, %v3173_v51, 0.0 }
 0x1be   : > { %2625 = vpow2.f32 %v1177_v43 }
 0x1bf   : > { %v3178_v18 = vpop.eup %2615 }
 0x1c0   : > { %v1251_v45 = vsel %vm986_vm1, %v3178_v18, 0.0  ;;  %v3185_v41 = vpop.eup %2617  ;;  %1261 = vadd.xlane.f32.xlu1 %v1260_v52 }
 0x1c1   : > { %1252 = vadd.xlane.f32.xlu0 %v1251_v45  ;;  %v1254_v3 = vsel %vm986_vm1, %v3185_v41, 0.0 }
 0x1c3   : > { %v3190_v42 = vpop.eup %2619 }
 0x1c4   : > { %v1263_v39 = vsel %vm986_vm1, %v3190_v42, 0.0  ;;  %v3197_v47 = vpop.eup %2621  ;;  %1255 = vadd.xlane.f32.xlu1 %v1254_v3  ;;  %v2552_v3 = vld [vmem:[%s2789_s28 + $0x28] sm:$0xff]  }
 0x1c5   : > { %1264 = vadd.xlane.f32.xlu0 %v1263_v39  ;;  %v1266_v61 = vsel %vm986_vm1, %v3197_v47, 0.0 }
 0x1c7   : > { %v3199_v57 = vpop.eup %2623 }
 0x1c8   : > { %v1269_v8 = vsel %vm986_vm1, %v3199_v57, 0.0  ;;  %v3205_v22 = vpop.eup %2625  ;;  %1267 = vadd.xlane.f32.xlu1 %v1266_v61 }
 0x1c9   : > { %1270 = vadd.xlane.f32.xlu0 %v1269_v8  ;;  %v1272_v2 = vsel %vm986_vm1, %v3205_v22, 0.0 }
 0x1cc   : > { %1273 = vadd.xlane.f32.xlu1 %v1272_v2 }
 0x219   : > { %v1187_v4 = vpop.xlane.xlu0 %1186 }
 0x21d   : > { %v1199_v12 = vpop.xlane.xlu0 %1198  ;;  %v1190_v7 = vpop.xlane.xlu1 %1189 }
 0x21e   : > { %2627 = vrcp.f32 %v1190_v7 }
 0x221   : > { %v1181_v9 = vpop.xlane.xlu0 %1180  ;;  %v1202_v15 = vpop.xlane.xlu1 %1201 }
 0x222   : > { %2629 = vrcp.f32 %v1181_v9 }
 0x223   : > { %2631 = vrcp.f32 %v1187_v4  ;;  %v2555_v4 = vld [vmem:[%s2789_s28 + $0x40] sm:$0xff]  }
 0x225   : > { %v1193_v35 = vpop.xlane.xlu0 %1192  ;;  %v1184_v37 = vpop.xlane.xlu1 %1183 }
 0x226   : > { %2633 = vrcp.f32 %v1184_v37 }
 0x227   : > { %2635 = vrcp.f32 %v1202_v15  ;;  %v2554_v15 = vld [vmem:[%s2789_s28 + $0x38] sm:$0xff]  }
 0x228   : > { %2637 = vrcp.f32 %v1193_v35  ;;  %v2628_v11 = vpop.eup %2627 }
 0x229   : > { %v1196_v62 = vpop.xlane.xlu1 %1195  ;;  %2639 = vrcp.f32 %v1199_v12  ;;  %v1310_v24 = vmul.f32 %v2628_v11, %v3053_v10 }
 0x22a   : > { %v1211_v50 = vpop.xlane.xlu0 %1210  ;;  %2641 = vrcp.f32 %v1196_v62 }
 0x22c   : > { %v2630_v25 = vpop.eup %2629 }
 0x22d   : > { %v1214_v46 = vpop.xlane.xlu1 %1213  ;;  %v2632_v14 = vpop.eup %2631  ;;  %v1307_v30 = vmul.f32 %v2630_v25, %v3059_v54 }
 0x22e   : > { %v1223_v13 = vpop.xlane.xlu0 %1222  ;;  %v1309_v40 = vmul.f32 %v2632_v14, %v3045_v60  ;;  %2643 = vrcp.f32 %v1214_v46 }
 0x230   : > { %v2634_v34 = vpop.eup %2633  ;;  %v1340_v39 = vpack.c.bf16 %v1310_v24, %v1309_v40  ;;  %v2557_v40 = vld [vmem:[%s2789_s28 + $0x48] sm:$0xff]  }
 0x231   : > { %v1226_v5 = vpop.xlane.xlu1 %1225  ;;  %v1308_v59 = vmul.f32 %v2634_v34, %v3073_v17  ;;  %v2636_v43 = vpop.eup %2635 }
 0x232   : > { %v1205_v48 = vpop.xlane.xlu0 %1204  ;;  %v2638_v29 = vpop.eup %2637  ;;  %v1314_v61 = vmul.f32 %v2636_v43, %v3063_v16 }
 0x233   : > { %v1339_v45 = vpack.c.bf16 %v1308_v59, %v1307_v30  ;;  %v2640_v52 = vpop.eup %2639  ;;  %2645 = vrcp.f32 %v1205_v48  ;;  %v1311_v60 = vmul.f32 %v2638_v29, %v3069_v19 }
 0x234   : > { %v2642_v8 = vpop.eup %2641  ;;  %2647 = vrcp.f32 %v1211_v50  ;;  %v1313_v2 = vmul.f32 %v2640_v52, %v3049_v58 }
 0x235   : > { %2452 = vmatprep.mubr.msk.bf16.mxu0 %vm986_vm1, %v1339_v45  ;;  %v1208_v54 = vpop.xlane.xlu1 %1207  ;;  %v1312_v17 = vmul.f32 %v2642_v8, %v3080_v26  ;;  %v2556_v26 = vld [vmem:[%s2789_s28 + $0x50] sm:$0xff]  }
 0x236   : > { %v1217_v10 = vpop.xlane.xlu0 %1216  ;;  %2453 = vmatmul.mubr.msk.bf16.vlgmr.msra.gmra.mrb[16].mxu0 %vm986_vm1, %v1340_v39  ;;  %2649 = vrcp.f32 %v1208_v54  ;;  %v1342_v9 = vpack.c.bf16 %v1314_v61, %v1313_v2  ;;  %v2558_v39 = vld [vmem:[%s2789_s28 + $0x58] sm:$0xff]  }
 0x237   : > { %2465 = vmatpush3.bf16.msra.mxu0 %v3176_v0  ;;  %2651 = vrcp.f32 %v1226_v5  ;;  %v1341_v16 = vpack.c.bf16 %v1312_v17, %v1311_v60 }
 0x238   : > { %2466 = vmatprep.subr.bf16.mxu0 %v2552_v3  ;;  %2653 = vrcp.f32 %v1217_v10  ;;  %v2644_v0 = vpop.eup %2643 }
 0x239   : > { %v1220_v7 = vpop.xlane.xlu1 %1219  ;;  %2655 = vrcp.f32 %v1223_v13  ;;  %2460 = vmatprep.mubr.msk.bf16.mxu1 %vm986_vm1, %v1341_v16  ;;  %v1318_v62 = vmul.f32 %v2644_v0, %v3085_v55 }
 0x23a   : > { %v1235_v12 = vpop.xlane.xlu0 %1234  ;;  %2657 = vrcp.f32 %v1220_v7  ;;  %2461 = vmatmul.mubr.msk.bf16.vlgmr.msra.gmra.mrb[16].mxu1 %vm986_vm1, %v1342_v9 }
 0x23b   : > { %2467 = vmatpush3.bf16.msra.mxu0 %v2552_v3  ;;  %2473 = vmatpush3.bf16.msra.mxu1 %v3188_v63  ;;  %v2559_v3 = vld [vmem:[%s2789_s28 + $0x60] sm:$0xff]  }
 0x23c   : > { %2480 = vmatprep.subr.bf16.mxu0 %v2555_v4  ;;  %2474 = vmatprep.subr.bf16.mxu1 %v2554_v15 }
 0x23d   : > { %v1238_v19 = vpop.xlane.xlu1 %1237  ;;  %v2646_v35 = vpop.eup %2645 }
 0x23e   : > { %v1247_v58 = vpop.xlane.xlu0 %1246  ;;  %v2648_v37 = vpop.eup %2647  ;;  %v1315_v25 = vmul.f32 %v2646_v35, %v3103_v1  ;;  %2659 = vrcp.f32 %v1238_v19 }
 0x23f   : > { %2475 = vmatpush3.bf16.msra.mxu1 %v2554_v15  ;;  %v1317_v34 = vmul.f32 %v2648_v37, %v3083_v38  ;;  %v2560_v37 = vld [vmem:[%s2789_s28 + $0x68] sm:$0xff]  }
 0x240   : > { %v2650_v50 = vpop.eup %2649  ;;  %2488 = vmatprep.subr.bf16.mxu1 %v2556_v26 }
 0x241   : > { %v1250_v13 = vpop.xlane.xlu1 %1249  ;;  %v2652_v46 = vpop.eup %2651  ;;  %v1316_v63 = vmul.f32 %v2650_v50, %v3110_v21  ;;  %v1344_v43 = vpack.c.bf16 %v1318_v62, %v1317_v34 }
 0x242   : > { %v1229_v11 = vpop.xlane.xlu0 %1228  ;;  %v2654_v14 = vpop.eup %2653  ;;  %v1322_v30 = vmul.f32 %v2652_v46, %v3100_v56 }
 0x243   : > { %v2656_v24 = vpop.eup %2655  ;;  %v1343_v48 = vpack.c.bf16 %v1316_v63, %v1315_v25  ;;  %2661 = vrcp.f32 %v1229_v11  ;;  %v1319_v1 = vmul.f32 %v2654_v14, %v3113_v23  ;;  %v2562_v11 = vld [vmem:[%s2789_s28 + $0x78] sm:$0xff]  }
 0x244   : > { %v2658_v5 = vpop.eup %2657  ;;  %2663 = vrcp.f32 %v1235_v12  ;;  %v1321_v21 = vmul.f32 %v2656_v24, %v3093_v49 }
 0x245   : > { %v1232_v59 = vpop.xlane.xlu1 %1231  ;;  %2468 = vmatprep.mubr.msk.bf16.mxu0 %vm986_vm1, %v1343_v48  ;;  %v1320_v38 = vmul.f32 %v2658_v5, %v3120_v33  ;;  %v2561_v33 = vld [vmem:[%s2789_s28 + $0x70] sm:$0xff]   ;;  %s2311_s28 = sshll.u32 %s3372_s17, 4  ;;  %s2699_s17 = smov 16  }
 0x246   : > { %v1241_v55 = vpop.xlane.xlu0 %1240  ;;  %2665 = vrcp.f32 %v1232_v59  ;;  %2469 = vmatmul.mubr.msk.bf16.vlgmr.msra.gmra.mrb[20].mxu0 %vm986_vm1, %v1344_v43  ;;  %v1346_v52 = vpack.c.bf16 %v1322_v30, %v1321_v21  ;;  %s3273_s14 = scalar_lea.vmem %s3370_s4, %s2311_s28 }
 0x247   : > { %2667 = vrcp.f32 %v1250_v13  ;;  %v1345_v56 = vpack.c.bf16 %v1320_v38, %v1319_v1  ;;  %2481 = vmatpush3.bf16.msra.mxu0 %v2555_v4 }
 0x248   : > { %2669 = vrcp.f32 %v1241_v55  ;;  %2482 = vmatprep.subr.bf16.mxu0 %v2557_v40  ;;  %v2660_v8 = vpop.eup %2659 }
 0x249   : > { %v1244_v45 = vpop.xlane.xlu1 %1243  ;;  %2671 = vrcp.f32 %v1247_v58  ;;  %2476 = vmatprep.mubr.msk.bf16.mxu1 %vm986_vm1, %v1345_v56  ;;  %v1326_v60 = vmul.f32 %v2660_v8, %v3130_v31 }
 0x24a   : > { %v1259_v29 = vpop.xlane.xlu0 %1258  ;;  %2673 = vrcp.f32 %v1244_v45  ;;  %2477 = vmatmul.mubr.msk.bf16.vlgmr.msra.gmra.mrb[20].mxu1 %vm986_vm1, %v1346_v52 }
 0x24b   : > { %2489 = vmatpush3.bf16.msra.mxu1 %v2556_v26  ;;  %2483 = vmatpush3.bf16.msra.mxu0 %v2557_v40 }
 0x24c   : > { %2490 = vmatprep.subr.bf16.mxu1 %v2558_v39  ;;  %2496 = vmatprep.subr.bf16.mxu0 %v2559_v3 }
 0x24d   : > { %v1262_v23 = vpop.xlane.xlu1 %1261  ;;  %v2662_v61 = vpop.eup %2661 }
 0x24e   : > { %v1253_v49 = vpop.xlane.xlu0 %1252  ;;  %v2664_v10 = vpop.eup %2663  ;;  %2675 = vrcp.f32 %v1262_v23  ;;  %v1323_v4 = vmul.f32 %v2662_v61, %v3146_v6 }
 0x24f   : > { %2491 = vmatpush3.bf16.msra.mxu1 %v2558_v39  ;;  %2677 = vrcp.f32 %v1253_v49  ;;  %v1325_v9 = vmul.f32 %v2664_v10, %v3123_v36 }
 0x250   : > { %v2666_v54 = vpop.eup %2665  ;;  %2504 = vmatprep.subr.bf16.mxu1 %v2561_v33  ;;  %2679 = vrcp.f32 %v1259_v29 }
 0x251   : > { %v1256_v2 = vpop.xlane.xlu1 %1255  ;;  %v2668_v16 = vpop.eup %2667  ;;  %v1324_v12 = vmul.f32 %v2666_v54, %v3153_v27  ;;  %v1348_v35 = vpack.c.bf16 %v1326_v60, %v1325_v9 }
 0x252   : > { %v1265_v17 = vpop.xlane.xlu0 %1264  ;;  %v2670_v7 = vpop.eup %2669  ;;  %2681 = vrcp.f32 %v1256_v2  ;;  %v1330_v31 = vmul.f32 %v2668_v16, %v3141_v53 }
 0x253   : > { %v2672_v15 = vpop.eup %2671  ;;  %v1347_v58 = vpack.c.bf16 %v1324_v12, %v1323_v4  ;;  %2683 = vrcp.f32 %v1265_v17  ;;  %v1327_v6 = vmul.f32 %v2670_v7, %v3157_v20 }
 0x254   : > { %v2674_v19 = vpop.eup %2673  ;;  %v1329_v36 = vmul.f32 %v2672_v15, %v3134_v44 }
 0x255   : > { %v1268_v0 = vpop.xlane.xlu1 %1267  ;;  %2484 = vmatprep.mubr.msk.bf16.mxu0 %vm986_vm1, %v1347_v58  ;;  %v1328_v27 = vmul.f32 %v2674_v19, %v3164_v28 }
 0x256   : > { %v1271_v26 = vpop.xlane.xlu0 %1270  ;;  %2685 = vrcp.f32 %v1268_v0  ;;  %2485 = vmatmul.mubr.msk.bf16.vlgmr.msra.gmra.mrb[24].mxu0 %vm986_vm1, %v1348_v35  ;;  %v1350_v62 = vpack.c.bf16 %v1330_v31, %v1329_v36 }
 0x257   : > { %2687 = vrcp.f32 %v1271_v26  ;;  %v1349_v50 = vpack.c.bf16 %v1328_v27, %v1327_v6  ;;  %2497 = vmatpush3.bf16.msra.mxu0 %v2559_v3 }
 0x258   : > { %2498 = vmatprep.subr.bf16.mxu0 %v2560_v37  ;;  %v2676_v13 = vpop.eup %2675 }
 0x259   : > { %v1274_v53 = vpop.xlane.xlu1 %1273  ;;  %2492 = vmatprep.mubr.msk.bf16.mxu1 %vm986_vm1, %v1349_v50  ;;  %v2678_v46 = vpop.eup %2677  ;;  %v1334_v28 = vmul.f32 %v2676_v13, %v3173_v51 }
 0x25a   : > { %2689 = vrcp.f32 %v1274_v53  ;;  %2493 = vmatmul.mubr.msk.bf16.vlgmr.msra.gmra.mrb[24].mxu1 %vm986_vm1, %v1350_v62  ;;  %v2680_v20 = vpop.eup %2679  ;;  %v1331_v25 = vmul.f32 %v2678_v46, %v3178_v18 }
 0x25b   : > { %2499 = vmatpush3.bf16.msra.mxu0 %v2560_v37  ;;  %2505 = vmatpush3.bf16.msra.mxu1 %v2561_v33  ;;  %v1333_v34 = vmul.f32 %v2680_v20, %v3167_v32 }
 0x25c   : > { %v2682_v44 = vpop.eup %2681  ;;  %2506 = vmatprep.subr.bf16.mxu1 %v2562_v11 }
 0x25d   : > { %v1332_v63 = vmul.f32 %v2682_v44, %v3185_v41  ;;  %v2684_v14 = vpop.eup %2683  ;;  %v1352_v5 = vpack.c.bf16 %v1334_v28, %v1333_v34 }
 0x25e   : > { %v1335_v55 = vmul.f32 %v2684_v14, %v3190_v42 }
 0x25f   : > { %v1351_v24 = vpack.c.bf16 %v1332_v63, %v1331_v25  ;;  %2507 = vmatpush3.bf16.msra.mxu1 %v2562_v11 }
 0x260   : > { %v2686_v48 = vpop.eup %2685 }
 0x261   : > { %v2688_v30 = vpop.eup %2687  ;;  %2500 = vmatprep.mubr.msk.bf16.mxu0 %vm986_vm1, %v1351_v24  ;;  %v1336_v51 = vmul.f32 %v2686_v48, %v3197_v47 }
 0x262   : > { %2501 = vmatmul.mubr.msk.bf16.vlgmr.msra.gmra.mrb[28].mxu0 %vm986_vm1, %v1352_v5  ;;  %v1337_v41 = vmul.f32 %v2688_v30, %v3199_v57 }
 0x263   : > { %v1353_v59 = vpack.c.bf16 %v1336_v51, %v1335_v55 }
 0x264   : > { %v2690_v18 = vpop.eup %2689 }
 0x265   : > { %v1338_v32 = vmul.f32 %v2690_v18, %v3205_v22  ;;  %2508 = vmatprep.mubr.msk.bf16.mxu1 %vm986_vm1, %v1353_v59 }
 0x267   : > { %v1354_v43 = vpack.c.bf16 %v1338_v32, %v1337_v41 }
 0x269   : > { %2509 = vmatmul.mubr.msk.bf16.vlgmr.msra.gmra.mrb[28].mxu1 %vm986_vm1, %v1354_v43 }
 0x309   : > { %v2454_v42 = vpop.f32.mrb[16].mxu0 }
 0x30a   : > { %v2314_v47 = vpack.c.bf16 %v2454_v42, %v2454_v42  ;;  %v1407_v57 = vpop.f32.mrb[17].mxu0 }
 0x30b   : > { %v2312_v22 = vpack.c.bf16 %v1407_v57, %v1407_v57  ;;  %v2455_v40 = vpop.f32.mrb[18].mxu0 }
 0x30c   : > { %1926 = vst.msk [vmem:[%s3273_s14 + $0x8] sm:$0xf] %vm1923_vm2, %v2314_v47  ;;  %v2315_v1 = vpack.c.bf16 %v2455_v40, %v2455_v40  ;;  %v1410_v38 = vpop.f32.mrb[19].mxu0 }
 0x30d   : > { %1924 = vst.msk [vmem:[%s3273_s14] sm:$0xf] %vm1923_vm2, %v2312_v22  ;;  %v2313_v21 = vpack.c.bf16 %v1410_v38, %v1410_v38  ;;  %v2462_v56 = vpop.f32.mrb[16].mxu1 }
 0x30e   : > { %1927 = vst.msk [vmem:[%s3273_s14 + $0xc] sm:$0xf] %vm1923_vm2, %v2315_v1  ;;  %v2322_v29 = vpack.c.bf16 %v2462_v56, %v2462_v56  ;;  %v1474_v45 = vpop.f32.mrb[17].mxu1 }
 0x30f   : > { %1925 = vst.msk [vmem:[%s3273_s14 + $0x4] sm:$0xf] %vm1923_vm2, %v2313_v21  ;;  %v2320_v52 = vpack.c.bf16 %v1474_v45, %v1474_v45  ;;  %v2463_v39 = vpop.f32.mrb[18].mxu1 }
 0x310   : > { %1960 = vrot.lane.b32.xlu1 %v2322_v29, %s2699_s17  ;;  %v1477_v3 = vpop.f32.mrb[19].mxu1  ;;  %v2323_v49 = vpack.c.bf16 %v2463_v39, %v2463_v39 }
 0x311   : > { %1956 = vrot.lane.b32.xlu0 %v2320_v52, %s2699_s17  ;;  %v2321_v23 = vpack.c.bf16 %v1477_v3, %v1477_v3 }
 0x314   : > { %1962 = vrot.lane.b32.xlu1 %v2323_v49, %s2699_s17 }
 0x318   : > { %1958 = vrot.lane.b32.xlu1 %v2321_v23, %s2699_s17 }
 0x319   : > { %v2470_v33 = vpop.f32.mrb[20].mxu0 }
 0x31a   : > { %v2330_v8 = vpack.c.bf16 %v2470_v33, %v2470_v33  ;;  %v1541_v61 = vpop.f32.mrb[21].mxu0 }
 0x31b   : > { %v2471_v10 = vpop.f32.mrb[22].mxu0  ;;  %v2328_v9 = vpack.c.bf16 %v1541_v61, %v1541_v61 }
 0x31c   : > { %v2331_v54 = vpack.c.bf16 %v2471_v10, %v2471_v10  ;;  %2017 = vrot.lane.b32.xlu0 %v2330_v8, %s2700_s16  ;;  %v1544_v60 = vpop.f32.mrb[23].mxu0 }
 0x31d   : > { %v2478_v17 = vpop.f32.mrb[20].mxu1  ;;  %v2329_v15 = vpack.c.bf16 %v1544_v60, %v1544_v60 }
 0x31e   : > { %v2338_v2 = vpack.c.bf16 %v2478_v17, %v2478_v17  ;;  %2019 = vrot.lane.b32.xlu1 %v2331_v54, %s2700_s16  ;;  %v1608_v16 = vpop.f32.mrb[21].mxu1 }
 0x31f   : > { %v2479_v4 = vpop.f32.mrb[22].mxu1  ;;  %v2336_v58 = vpack.c.bf16 %v1608_v16, %v1608_v16 }
 0x320   : > { %v2339_v12 = vpack.c.bf16 %v2479_v4, %v2479_v4  ;;  %2074 = vrot.lane.b32.xlu0 %v2338_v2, %s2701_s18  ;;  %v1611_v7 = vpop.f32.mrb[23].mxu1 }
 0x321   : > { %v2337_v19 = vpack.c.bf16 %v1611_v7, %v1611_v7 }
 0x322   : > { %2076 = vrot.lane.b32.xlu1 %v2339_v12, %s2701_s18 }
 0x324   : > { %2013 = vrot.lane.b32.xlu0 %v2328_v9, %s2700_s16 }
 0x326   : > { %2015 = vrot.lane.b32.xlu1 %v2329_v15, %s2700_s16 }
 0x328   : > { %2070 = vrot.lane.b32.xlu0 %v2336_v58, %s2701_s18 }
 0x329   : > { %v2486_v31 = vpop.f32.mrb[24].mxu0 }
 0x32a   : > { %v2318_v26 = vpack.c.bf16 %v2486_v31, %v2486_v31  ;;  %2072 = vrot.lane.b32.xlu1 %v2337_v19, %s2701_s18  ;;  %v1675_v0 = vpop.f32.mrb[25].mxu0 }
 0x32b   : > { %v2316_v35 = vpack.c.bf16 %v1675_v0, %v1675_v0  ;;  %v2487_v37 = vpop.f32.mrb[26].mxu0 }
 0x32c   : > { %1930 = vst.msk [vmem:[%s3273_s14 + $0x18] sm:$0xf] %vm1923_vm2, %v2318_v26  ;;  %v2319_v6 = vpack.c.bf16 %v2487_v37, %v2487_v37  ;;  %v1678_v27 = vpop.f32.mrb[27].mxu0 }
 0x32d   : > { %1928 = vst.msk [vmem:[%s3273_s14 + $0x10] sm:$0xf] %vm1923_vm2, %v2316_v35  ;;  %v2317_v36 = vpack.c.bf16 %v1678_v27, %v1678_v27  ;;  %v2494_v50 = vpop.f32.mrb[24].mxu1 }
 0x32e   : > { %1931 = vst.msk [vmem:[%s3273_s14 + $0x1c] sm:$0xf] %vm1923_vm2, %v2319_v6  ;;  %v2326_v53 = vpack.c.bf16 %v2494_v50, %v2494_v50  ;;  %v1742_v62 = vpop.f32.mrb[25].mxu1 }
 0x32f   : > { %1929 = vst.msk [vmem:[%s3273_s14 + $0x14] sm:$0xf] %vm1923_vm2, %v2317_v36  ;;  %v2495_v11 = vpop.f32.mrb[26].mxu1  ;;  %v2324_v20 = vpack.c.bf16 %v1742_v62, %v1742_v62 }
 0x330   : > { %v2327_v13 = vpack.c.bf16 %v2495_v11, %v2495_v11  ;;  %1968 = vrot.lane.b32.xlu0 %v2326_v53, %s2699_s17  ;;  %v1745_v46 = vpop.f32.mrb[27].mxu1 }
 0x331   : > { %v2325_v44 = vpack.c.bf16 %v1745_v46, %v1745_v46 }
 0x332   : > { %1970 = vrot.lane.b32.xlu1 %v2327_v13, %s2699_s17 }
 0x334   : > { %1964 = vrot.lane.b32.xlu0 %v2324_v20, %s2699_s17 }
 0x335   : > { %v2502_v28 = vpop.f32.mrb[28].mxu0 }
 0x336   : > { %v2334_v25 = vpack.c.bf16 %v2502_v28, %v2502_v28  ;;  %1966 = vrot.lane.b32.xlu1 %v2325_v44, %s2699_s17  ;;  %v1809_v63 = vpop.f32.mrb[29].mxu0 }
 0x337   : > { %v2503_v14 = vpop.f32.mrb[30].mxu0  ;;  %v2332_v48 = vpack.c.bf16 %v1809_v63, %v1809_v63 }
 0x338   : > { %v2335_v34 = vpack.c.bf16 %v2503_v14, %v2503_v14  ;;  %2025 = vrot.lane.b32.xlu0 %v2334_v25, %s2700_s16  ;;  %v1812_v24 = vpop.f32.mrb[31].mxu0 }
 0x339   : > { %v2333_v30 = vpack.c.bf16 %v1812_v24, %v1812_v24 }
 0x33a   : > { %2027 = vrot.lane.b32.xlu1 %v2335_v34, %s2700_s16 }
 0x33c   : > { %v2510_v5 = vpop.f32.mrb[28].mxu1  ;;  %2021 = vrot.lane.b32.xlu0 %v2332_v48, %s2700_s16 }
 0x33d   : > { %v1876_v55 = vpop.f32.mrb[29].mxu1  ;;  %v2342_v32 = vpack.c.bf16 %v2510_v5, %v2510_v5 }
 0x33e   : > { %v2340_v51 = vpack.c.bf16 %v1876_v55, %v1876_v55  ;;  %v2511_v18 = vpop.f32.mrb[30].mxu1  ;;  %2023 = vrot.lane.b32.xlu1 %v2333_v30, %s2700_s16 }
 0x33f   : > { %v1879_v59 = vpop.f32.mrb[31].mxu1  ;;  %v2343_v43 = vpack.c.bf16 %v2511_v18, %v2511_v18 }
 0x340   : > { %v2341_v41 = vpack.c.bf16 %v1879_v59, %v1879_v59  ;;  %2078 = vrot.lane.b32.xlu0 %v2340_v51, %s2701_s18 }
 0x342   : > { %2080 = vrot.lane.b32.xlu1 %v2341_v41, %s2701_s18 }
 0x344   : > { %2082 = vrot.lane.b32.xlu0 %v2342_v32, %s2701_s18 }
 0x346   : > { %2084 = vrot.lane.b32.xlu1 %v2343_v43, %s2701_s18 }
 0x382   : > { %v1961_v42 = vpop.permute.xlu1 %1960 }
 0x383   : > { %1983 = vst.msk [vmem:[%s3273_s14 + $0x8] sm:$0xf] %vm1980_vm3, %v1961_v42  ;;  %v1957_v47 = vpop.permute.xlu0 %1956 }
 0x384   : > { %1981 = vst.msk [vmem:[%s3273_s14] sm:$0xf] %vm1980_vm3, %v1957_v47 }
 0x386   : > { %v1963_v57 = vpop.permute.xlu1 %1962 }
 0x387   : > { %1984 = vst.msk [vmem:[%s3273_s14 + $0xc] sm:$0xf] %vm1980_vm3, %v1963_v57 }
 0x38a   : > { %v1959_v22 = vpop.permute.xlu1 %1958 }
 0x38b   : > { %1982 = vst.msk [vmem:[%s3273_s14 + $0x4] sm:$0xf] %vm1980_vm3, %v1959_v22 }
 0x38e   : > { %v2018_v40 = vpop.permute.xlu0 %2017 }
 0x38f   : > { %2040 = vst.msk [vmem:[%s3273_s14 + $0x8] sm:$0xf] %vm2037_vm4, %v2018_v40 }
 0x390   : > { %v2020_v1 = vpop.permute.xlu1 %2019 }
 0x391   : > { %2041 = vst.msk [vmem:[%s3273_s14 + $0xc] sm:$0xf] %vm2037_vm4, %v2020_v1 }
 0x392   : > { %v2075_v38 = vpop.permute.xlu0 %2074 }
 0x393   : > { %2097 = vst.msk [vmem:[%s3273_s14 + $0x8] sm:$0xf] %vm2094_vm5, %v2075_v38 }
 0x394   : > { %v2077_v21 = vpop.permute.xlu1 %2076 }
 0x395   : > { %2098 = vst.msk [vmem:[%s3273_s14 + $0xc] sm:$0xf] %vm2094_vm5, %v2077_v21 }
 0x396   : > { %v2014_v56 = vpop.permute.xlu0 %2013 }
 0x397   : > { %2038 = vst.msk [vmem:[%s3273_s14] sm:$0xf] %vm2037_vm4, %v2014_v56 }
 0x398   : > { %v2016_v29 = vpop.permute.xlu1 %2015 }
 0x399   : > { %2039 = vst.msk [vmem:[%s3273_s14 + $0x4] sm:$0xf] %vm2037_vm4, %v2016_v29 }
 0x39a   : > { %v2071_v45 = vpop.permute.xlu0 %2070 }
 0x39b   : > { %2095 = vst.msk [vmem:[%s3273_s14] sm:$0xf] %vm2094_vm5, %v2071_v45 }
 0x39c   : > { %v2073_v52 = vpop.permute.xlu1 %2072 }
 0x39d   : > { %2096 = vst.msk [vmem:[%s3273_s14 + $0x4] sm:$0xf] %vm2094_vm5, %v2073_v52 }
 0x3a2   : > { %v1969_v39 = vpop.permute.xlu0 %1968 }
 0x3a3   : > { %1987 = vst.msk [vmem:[%s3273_s14 + $0x18] sm:$0xf] %vm1980_vm3, %v1969_v39 }
 0x3a4   : > { %v1971_v3 = vpop.permute.xlu1 %1970 }
 0x3a5   : > { %1988 = vst.msk [vmem:[%s3273_s14 + $0x1c] sm:$0xf] %vm1980_vm3, %v1971_v3 }
 0x3a6   : > { %v1965_v49 = vpop.permute.xlu0 %1964 }
 0x3a7   : > { %1985 = vst.msk [vmem:[%s3273_s14 + $0x10] sm:$0xf] %vm1980_vm3, %v1965_v49 }
 0x3a8   : > { %v1967_v23 = vpop.permute.xlu1 %1966 }
 0x3a9   : > { %1986 = vst.msk [vmem:[%s3273_s14 + $0x14] sm:$0xf] %vm1980_vm3, %v1967_v23 }
 0x3aa   : > { %v2026_v33 = vpop.permute.xlu0 %2025 }
 0x3ab   : > { %2044 = vst.msk [vmem:[%s3273_s14 + $0x18] sm:$0xf] %vm2037_vm4, %v2026_v33 }
 0x3ac   : > { %v2028_v8 = vpop.permute.xlu1 %2027 }
 0x3ad   : > { %2045 = vst.msk [vmem:[%s3273_s14 + $0x1c] sm:$0xf] %vm2037_vm4, %v2028_v8 }
 0x3ae   : > { %v2022_v61 = vpop.permute.xlu0 %2021 }
 0x3af   : > { %2042 = vst.msk [vmem:[%s3273_s14 + $0x10] sm:$0xf] %vm2037_vm4, %v2022_v61 }
 0x3b0   : > { %v2024_v10 = vpop.permute.xlu1 %2023 }
 0x3b1   : > { %2043 = vst.msk [vmem:[%s3273_s14 + $0x14] sm:$0xf] %vm2037_vm4, %v2024_v10 }
 0x3b2   : > { %v2079_v54 = vpop.permute.xlu0 %2078 }
 0x3b3   : > { %2099 = vst.msk [vmem:[%s3273_s14 + $0x10] sm:$0xf] %vm2094_vm5, %v2079_v54 }
 0x3b4   : > { %v2081_v60 = vpop.permute.xlu1 %2080 }
 0x3b5   : > { %2100 = vst.msk [vmem:[%s3273_s14 + $0x14] sm:$0xf] %vm2094_vm5, %v2081_v60 }
 0x3b6   : > { %v2083_v17 = vpop.permute.xlu0 %2082 }
 0x3b7   : > { %2101 = vst.msk [vmem:[%s3273_s14 + $0x18] sm:$0xf] %vm2094_vm5, %v2083_v17 }
 0x3b8   : > { %v2085_v2 = vpop.permute.xlu1 %2084 }
 0x3b9   : > { %2102 = vst.msk [vmem:[%s3273_s14 + $0x1c] sm:$0xf] %vm2094_vm5, %v2085_v2 }
 0x3ba PF: > { %s14_s15 = sadd.s32 1, %s2697_s15  }
 0x3bb   : > { %p11_p4 = scmp.ge.s32.totalorder %s14_s15, 4  }
 0x3bd   :  { %13 = sbr.rel (!%p11_p4) target bundleno = 1 (0x1), region = 72 }

</bundles_post_ra>
